<compile_context>
chip_gen: v7x
topology: tpu7x:2x2x1
jax: 0.10.0
libtpu: 0.0.40
codegen_flags: <defaults>
</compile_context>

<pallas_src>
import functools

import jax
import jax.numpy as jnp
from jax.experimental import pallas as pl
from jax.experimental.pallas import tpu as pltpu


_TAPS = ((0, 0), (0, 1), (1, 0), (1, 1))      # (dy, dx) order of the 2x2 taps


# ----------------------------------------------------------------------------
# Fused forward kernel
# ----------------------------------------------------------------------------

def _fused_ac_kernel(img_ref,                       # (h1, w1, BB, 12)  bf16
                     c1w_ref, c1b_ref,              # (12, 16) bf16, (1, 16) f32
                     c2w_ref, c2b_ref,              # (64, 32) bf16, (1, 32) f32
                     c3w_ref, c3b_ref,              # (128, 64) bf16, (1, 64) f32
                     hw1_ref, hb1_ref,              # (E, 128) bf16, (1, 128) f32
                     hw2_ref, hb2_ref,              # (128, 128) bf16, (1, 128) f32
                     out_ref,                       # (BB, 128) f32
                     pooled_ref,                    # (hp, wp, BB, 16) bf16 scratch
                     y2_ref,                        # (h2, w2, BB, 32) bf16 scratch
                     *, num_actions):
    f32 = jnp.float32
    bf16 = jnp.bfloat16
    h1, w1 = img_ref.shape[0], img_ref.shape[1]
    hp, wp = h1 // 2, w1 // 2        # after 2x2 max-pool
    h2, w2 = hp - 1, wp - 1          # conv2 output
    h3, w3 = h2 - 1, w2 - 1          # conv3 output

    # ---- conv1 (tap-fused, K=12) + bias + ReLU + 2x2 max-pool -> VMEM scratch
    for p in range(hp):
        for q in range(wp):
            vals = []
            for dy, dx in _TAPS:
                acc = jnp.dot(img_ref[2 * p + dy, 2 * q + dx], c1w_ref[...],
                              preferred_element_type=f32) + c1b_ref[...]
                vals.append(jnp.maximum(acc, 0.0))
            m = jnp.maximum(jnp.maximum(vals[0], vals[1]),
                            jnp.maximum(vals[2], vals[3]))
            pooled_ref[p, q] = m.astype(bf16)

    # ---- conv2 (tap-fused, K=64) + bias + ReLU -> VMEM scratch --------------
    for r in range(h2):
        for s in range(w2):
            lhs = jnp.concatenate(
                [pooled_ref[r + dy, s + dx] for dy, dx in _TAPS], axis=-1)
            acc = jnp.dot(lhs, c2w_ref[...],
                          preferred_element_type=f32) + c2b_ref[...]
            y2_ref[r, s] = jnp.maximum(acc, 0.0).astype(bf16)

    # ---- conv3 (tap-fused, K=128) + bias + ReLU ------------------------------
    y3 = []
    for u in range(h3):
        for v in range(w3):
            lhs = jnp.concatenate(
                [y2_ref[u + dy, v + dx] for dy, dx in _TAPS], axis=-1)
            acc = jnp.dot(lhs, c3w_ref[...],
                          preferred_element_type=f32) + c3b_ref[...]
            y3.append(jnp.maximum(acc, 0.0))

    # NHWC flatten (== torch NCHW flatten since the feature map is 1x1 here).
    emb = y3[0] if len(y3) == 1 else jnp.concatenate(y3, axis=-1)

    # ---- fused actor/critic heads (lane-dense 128-wide matmuls) -------------
    hid = jnp.tanh(jnp.dot(emb.astype(bf16), hw1_ref[...],
                           preferred_element_type=f32) + hb1_ref[...])
    y = jnp.dot(hid.astype(bf16), hw2_ref[...],
                preferred_element_type=f32) + hb2_ref[...]            # (BB,128)

    # log-softmax over the first `num_actions` lanes, all in f32.
    lane = jax.lax.broadcasted_iota(jnp.int32, y.shape, 1)
    is_logit = lane < num_actions
    logits = jnp.where(is_logit, y, -1e30)
    mx = jnp.max(logits, axis=-1, keepdims=True)
    z = logits - mx
    lse = jnp.log(jnp.sum(jnp.exp(z), axis=-1, keepdims=True))
    # lanes [0, A): log-probs; lane A: critic value; lanes > A: explicit 0.
    out_ref[...] = jnp.where(is_logit, z - lse,
                             jnp.where(lane == num_actions, y, 0.0))


# ----------------------------------------------------------------------------
# Wrapper
# ----------------------------------------------------------------------------

@functools.partial(jax.jit, static_argnames=("num_actions",))
def ac_model_forward(params, image, memory, *, num_actions):
    """Returns (action log-probs, value, memory).

    The Categorical action distribution is represented by its log-softmaxed
    logits.  use_memory=False -> memory is passed through unchanged.
    """
    B, H, W, Cin = image.shape
    bf16 = jnp.bfloat16

    # Batch block: multiple of 8, capped at 128, aim for >= 2 grid steps so
    # dimension_semantics=("parallel",) can shard across v7x's 2 TensorCores.
    b8 = ((max(B, 1) + 7) // 8) * 8
    BB = max(8, min(128, ((((b8 + 1) // 2) + 7) // 8) * 8))
    Bp = ((B + BB - 1) // BB) * BB
    if Bp != B:
        image = jnp.pad(image, ((0, Bp - B), (0, 0), (0, 0), (0, 0)))

    # Wrapper-side im2col for conv1: (H-1, W-1, Bp, 4*Cin) with batch on the
    # sub-lane axis and the 4 conv taps packed tap-major on the lane axis.
    img = jnp.transpose(image, (1, 2, 0, 3))              # (H, W, Bp, Cin)
    h1, w1 = H - 1, W - 1
    img_taps = jnp.concatenate(
        [img[dy:dy + h1, dx:dx + w1] for dy, dx in _TAPS], axis=-1
    ).astype(bf16)                                         # (h1, w1, Bp, 4*Cin)

    hp, wp = h1 // 2, w1 // 2
    h2, w2 = hp - 1, wp - 1

    # bf16 MXU operands; biases stay f32.
    operands = (
        img_taps,
        params["c1w"].astype(bf16), params["c1b"],
        params["c2w"].astype(bf16), params["c2b"],
        params["c3w"].astype(bf16), params["c3b"],
        params["hw1"].astype(bf16), params["hb1"],
        params["hw2"].astype(bf16), params["hb2"],
    )

    def full(x):
        nd = x.ndim
        return pl.BlockSpec(x.shape, lambda b, _nd=nd: (0,) * _nd)

    kernel = functools.partial(_fused_ac_kernel, num_actions=num_actions)
    out = pl.pallas_call(
        kernel,
        out_shape=jax.ShapeDtypeStruct((Bp, 128), jnp.float32),
        grid=(Bp // BB,),
        in_specs=[pl.BlockSpec((h1, w1, BB, 4 * Cin), lambda b: (0, 0, b, 0))]
                 + [full(x) for x in operands[1:]],
        out_specs=pl.BlockSpec((BB, 128), lambda b: (b, 0)),
        scratch_shapes=[pltpu.VMEM((hp, wp, BB, 16), bf16),
                        pltpu.VMEM((h2, w2, BB, 32), bf16)],
        compiler_params=pltpu.CompilerParams(
            dimension_semantics=("parallel",)),
    )(*operands)

    logp = out[:B, :num_actions]
    value = out[:B, num_actions]
    # TODO(synk): LSTMCell memory branch (use_memory=True) and GRU/Embedding
    # text branch (use_text=True) are disabled in the default config and are
    # not implemented; memory is passed through unchanged.
    return logp, value, memory


# ----------------------------------------------------------------------------
# Deterministic parameter init (mirrors ACModel.__init__ + init_params),
# packed directly into the fused-kernel layout: conv weights as (4*Cin, Cout)
# tap-major, heads fused / zero-padded into (E,128) and (128,128) matmuls.
# ----------------------------------------------------------------------------

def init_ac_params(key, n=7, m=7, num_actions=7):
    assert 0 < num_actions <= 127
    assert n >= 7 and m >= 7
    emb = ((n - 1) // 2 - 2) * ((m - 1) // 2 - 2) * 64
    ks = jax.random.split(key, 7)

    def conv_init(k, cin, cout):
        fan_in = 2 * 2 * cin
        w = jax.random.normal(k, (2, 2, cin, cout), jnp.float32) / jnp.sqrt(float(fan_in))
        return w.reshape(4 * cin, cout), jnp.zeros((1, cout), jnp.float32)

    def linear_init(k, in_dim, out_dim):
        # matches init_params: N(0,1) rows normalised to unit L2 norm, bias=0.
        w = jax.random.normal(k, (out_dim, in_dim), jnp.float32)
        w = w / jnp.sqrt(jnp.sum(w * w, axis=1, keepdims=True))
        return w.T, jnp.zeros((out_dim,), jnp.float32)      # stored (in, out)

    c1w, c1b = conv_init(ks[0], 3, 16)
    c2w, c2b = conv_init(ks[1], 16, 32)
    c3w, c3b = conv_init(ks[2], 32, 64)
    aw1, ab1 = linear_init(ks[3], emb, 64)
    aw2, ab2 = linear_init(ks[4], 64, num_actions)
    cw1, cb1 = linear_init(ks[5], emb, 64)
    cw2, cb2 = linear_init(ks[6], 64, 1)

    # Fuse actor/critic hidden layers into one lane-dense (E, 128) matmul.
    hw1 = jnp.concatenate([aw1, cw1], axis=1)                # (E, 128)
    hb1 = jnp.concatenate([ab1, cb1])[None, :]               # (1, 128)

    # Fuse + zero-pad both output heads into one (128, 128) matmul:
    # columns [0, A) -> actor logits, column A -> critic value, rest zero.
    hw2 = jnp.zeros((128, 128), jnp.float32)
    hw2 = hw2.at[:64, :num_actions].set(aw2)
    hw2 = hw2.at[64:, num_actions].set(cw2[:, 0])
    hb2 = jnp.zeros((128,), jnp.float32)
    hb2 = hb2.at[:num_actions].set(ab2)
    hb2 = hb2.at[num_actions].set(cb2[0])
    hb2 = hb2[None, :]

    return dict(c1w=c1w, c1b=c1b, c2w=c2w, c2b=c2b, c3w=c3w, c3b=c3b,
                hw1=hw1, hb1=hb1, hw2=hw2, hb2=hb2)


# ----------------------------------------------------------------------------
# Pure-jnp (XLA) reference of the same math (bf16 MXU operands, f32 accum),
# for verification.
# ----------------------------------------------------------------------------

def _reference_forward(params, image, num_actions):
    bf = jnp.bfloat16
    f32 = jnp.float32

    def conv2x2_relu(x, w, b):
        # x: (B,H,W,C) f32; w: (4*C, Cout); b: (1, Cout)
        _, Hx, Wx, _ = x.shape
        taps = [x[:, dy:Hx - 1 + dy, dx:Wx - 1 + dx, :] for dy, dx in _TAPS]
        xc = jnp.concatenate(taps, axis=-1).astype(bf)
        y = jnp.einsum("bhwc,cd->bhwd", xc, w.astype(bf),
                       preferred_element_type=f32)
        return jnp.maximum(y + b.reshape(1, 1, 1, -1), 0.0)

    x = conv2x2_relu(image, params["c1w"], params["c1b"])
    Hx, Wx = x.shape[1], x.shape[2]
    x = x[:, : Hx // 2 * 2, : Wx // 2 * 2, :]
    x = jnp.maximum(jnp.maximum(x[:, 0::2, 0::2], x[:, 0::2, 1::2]),
                    jnp.maximum(x[:, 1::2, 0::2], x[:, 1::2, 1::2]))
    x = conv2x2_relu(x, params["c2w"], params["c2b"])
    x = conv2x2_relu(x, params["c3w"], params["c3b"])
    e = x.reshape(x.shape[0], -1)                 # NHWC flatten (same as kernel)
    h = jnp.tanh(jnp.dot(e.astype(bf), params["hw1"].astype(bf),
                         preferred_element_type=f32) + params["hb1"])
    y = jnp.dot(h.astype(bf), params["hw2"].astype(bf),
                preferred_element_type=f32) + params["hb2"]
    logp = jax.nn.log_softmax(y[:, :num_actions], axis=-1)
    value = y[:, num_actions]
    return logp, value


# ----------------------------------------------------------------------------

if __name__ == "__main__":
    B, n, m, A = 2, 7, 7, 7      # minigrid-style 7x7x3 observation, 7 actions
    key = jax.random.PRNGKey(0)
    pkey, ikey = jax.random.split(key)

    params = init_ac_params(pkey, n, m, A)
    image = jax.random.uniform(ikey, (B, n, m, 3), jnp.float32, 0.0, 10.0)
    emb_size = ((n - 1) // 2 - 2) * ((m - 1) // 2 - 2) * 64      # = 64
    memory = jnp.zeros((B, 2 * emb_size), jnp.float32)

    logp, value, mem_out = ac_model_forward(params, image, memory, num_actions=A)
    jax.block_until_ready((logp, value, mem_out))

    assert logp.shape == (B, A)
    assert value.shape == (B,)
    assert mem_out.shape == (B, 2 * emb_size)
    # log-softmax rows must exponentiate to a valid distribution
    assert bool(jnp.allclose(jnp.sum(jnp.exp(logp), axis=1), 1.0, atol=1e-4))
    # numerical check against a pure-jnp (XLA) reference of the same math
    ref_logp, ref_value = _reference_forward(params, image, A)
    assert bool(jnp.allclose(logp, ref_logp, rtol=2e-2, atol=2e-2))
    assert bool(jnp.allclose(value, ref_value, rtol=2e-2, atol=2e-2))
    print("KERNEL_OK")
</pallas_src>

<mosaic_0001>
module attributes {stable_mosaic.version = 11 : i64} {
  func.func @_fused_ac_kernel(%arg0: i32, %arg1: memref<6x6x8x12xbf16, #tpu.memory_space<vmem>>, %arg2: memref<12x16xbf16, #tpu.memory_space<vmem>>, %arg3: memref<1x16xf32, #tpu.memory_space<vmem>>, %arg4: memref<64x32xbf16, #tpu.memory_space<vmem>>, %arg5: memref<1x32xf32, #tpu.memory_space<vmem>>, %arg6: memref<128x64xbf16, #tpu.memory_space<vmem>>, %arg7: memref<1x64xf32, #tpu.memory_space<vmem>>, %arg8: memref<64x128xbf16, #tpu.memory_space<vmem>>, %arg9: memref<1x128xf32, #tpu.memory_space<vmem>>, %arg10: memref<128x128xbf16, #tpu.memory_space<vmem>>, %arg11: memref<1x128xf32, #tpu.memory_space<vmem>>, %arg12: memref<8x128xf32, #tpu.memory_space<vmem>>, %arg13: memref<3x3x8x16xbf16, #tpu.memory_space<vmem>>, %arg14: memref<2x2x8x32xbf16, #tpu.memory_space<vmem>>) attributes {dimension_semantics = [#tpu.dimension_semantics<parallel>], iteration_bounds = array<i64: 1>, scalar_prefetch = 0 : i64, scratch_operands = 2 : i64, tpu.core_type = #tpu.core_type<tc>, window_params = [{transform_indices = @transform_0, window_bounds = array<i64: 6, 6, 8, 12>}, {pipeline_mode = #tpu.pipeline_mode<synchronous>, transform_indices = @transform_1, window_bounds = array<i64: 12, 16>}, {pipeline_mode = #tpu.pipeline_mode<synchronous>, transform_indices = @transform_2, window_bounds = array<i64: 1, 16>}, {pipeline_mode = #tpu.pipeline_mode<synchronous>, transform_indices = @transform_3, window_bounds = array<i64: 64, 32>}, {pipeline_mode = #tpu.pipeline_mode<synchronous>, transform_indices = @transform_4, window_bounds = array<i64: 1, 32>}, {pipeline_mode = #tpu.pipeline_mode<synchronous>, transform_indices = @transform_5, window_bounds = array<i64: 128, 64>}, {pipeline_mode = #tpu.pipeline_mode<synchronous>, transform_indices = @transform_6, window_bounds = array<i64: 1, 64>}, {pipeline_mode = #tpu.pipeline_mode<synchronous>, transform_indices = @transform_7, window_bounds = array<i64: 64, 128>}, {pipeline_mode = #tpu.pipeline_mode<synchronous>, transform_indices = @transform_8, window_bounds = array<i64: 1, 128>}, {pipeline_mode = #tpu.pipeline_mode<synchronous>, transform_indices = @transform_9, window_bounds = array<i64: 128, 128>}, {pipeline_mode = #tpu.pipeline_mode<synchronous>, transform_indices = @transform_10, window_bounds = array<i64: 1, 128>}, {transform_indices = @transform_11, window_bounds = array<i64: 8, 128>}]} {
    %c0 = arith.constant 0 : index
    %c0_0 = arith.constant 0 : index
    %c0_1 = arith.constant 0 : index
    %c0_2 = arith.constant 0 : index
    %0 = vector.load %arg1[%c0, %c0_0, %c0_1, %c0_2] : memref<6x6x8x12xbf16, #tpu.memory_space<vmem>>, vector<1x1x8x12xbf16>
    %1 = vector.shape_cast %0 : vector<1x1x8x12xbf16> to vector<8x12xbf16>
    %c0_3 = arith.constant 0 : index
    %c0_4 = arith.constant 0 : index
    %2 = vector.load %arg2[%c0_3, %c0_4] : memref<12x16xbf16, #tpu.memory_space<vmem>>, vector<12x16xbf16>
    %cst = arith.constant dense<0.000000e+00> : vector<8x16xf32>
    %3 = tpu.matmul %1, %2, %cst {dimension_numbers = #tpu.dot_dimension_numbers<[1], [0], [0], [1], [0, 0, 1, 1], [], []>} : vector<8x12xbf16>, vector<12x16xbf16>, vector<8x16xf32> -> vector<8x16xf32>
    %c0_5 = arith.constant 0 : index
    %c0_6 = arith.constant 0 : index
    %4 = vector.load %arg3[%c0_5, %c0_6] : memref<1x16xf32, #tpu.memory_space<vmem>>, vector<1x16xf32>
    %5 = vector.broadcast %4 : vector<1x16xf32> to vector<8x16xf32>
    %6 = arith.addf %3, %5 : vector<8x16xf32>
    %cst_7 = arith.constant 0.000000e+00 : f32
    %7 = vector.broadcast %cst_7 : f32 to vector<8x16xf32>
    %8 = arith.maximumf %6, %7 : vector<8x16xf32>
    %c0_8 = arith.constant 0 : index
    %c1 = arith.constant 1 : index
    %c0_9 = arith.constant 0 : index
    %c0_10 = arith.constant 0 : index
    %9 = vector.load %arg1[%c0_8, %c1, %c0_9, %c0_10] : memref<6x6x8x12xbf16, #tpu.memory_space<vmem>>, vector<1x1x8x12xbf16>
    %10 = vector.shape_cast %9 : vector<1x1x8x12xbf16> to vector<8x12xbf16>
    %c0_11 = arith.constant 0 : index
    %c0_12 = arith.constant 0 : index
    %11 = vector.load %arg2[%c0_11, %c0_12] : memref<12x16xbf16, #tpu.memory_space<vmem>>, vector<12x16xbf16>
    %cst_13 = arith.constant dense<0.000000e+00> : vector<8x16xf32>
    %12 = tpu.matmul %10, %11, %cst_13 {dimension_numbers = #tpu.dot_dimension_numbers<[1], [0], [0], [1], [0, 0, 1, 1], [], []>} : vector<8x12xbf16>, vector<12x16xbf16>, vector<8x16xf32> -> vector<8x16xf32>
    %c0_14 = arith.constant 0 : index
    %c0_15 = arith.constant 0 : index
    %13 = vector.load %arg3[%c0_14, %c0_15] : memref<1x16xf32, #tpu.memory_space<vmem>>, vector<1x16xf32>
    %14 = vector.broadcast %13 : vector<1x16xf32> to vector<8x16xf32>
    %15 = arith.addf %12, %14 : vector<8x16xf32>
    %cst_16 = arith.constant 0.000000e+00 : f32
    %16 = vector.broadcast %cst_16 : f32 to vector<8x16xf32>
    %17 = arith.maximumf %15, %16 : vector<8x16xf32>
    %c1_17 = arith.constant 1 : index
    %c0_18 = arith.constant 0 : index
    %c0_19 = arith.constant 0 : index
    %c0_20 = arith.constant 0 : index
    %18 = vector.load %arg1[%c1_17, %c0_18, %c0_19, %c0_20] : memref<6x6x8x12xbf16, #tpu.memory_space<vmem>>, vector<1x1x8x12xbf16>
    %19 = vector.shape_cast %18 : vector<1x1x8x12xbf16> to vector<8x12xbf16>
    %c0_21 = arith.constant 0 : index
    %c0_22 = arith.constant 0 : index
    %20 = vector.load %arg2[%c0_21, %c0_22] : memref<12x16xbf16, #tpu.memory_space<vmem>>, vector<12x16xbf16>
    %cst_23 = arith.constant dense<0.000000e+00> : vector<8x16xf32>
    %21 = tpu.matmul %19, %20, %cst_23 {dimension_numbers = #tpu.dot_dimension_numbers<[1], [0], [0], [1], [0, 0, 1, 1], [], []>} : vector<8x12xbf16>, vector<12x16xbf16>, vector<8x16xf32> -> vector<8x16xf32>
    %c0_24 = arith.constant 0 : index
    %c0_25 = arith.constant 0 : index
    %22 = vector.load %arg3[%c0_24, %c0_25] : memref<1x16xf32, #tpu.memory_space<vmem>>, vector<1x16xf32>
    %23 = vector.broadcast %22 : vector<1x16xf32> to vector<8x16xf32>
    %24 = arith.addf %21, %23 : vector<8x16xf32>
    %cst_26 = arith.constant 0.000000e+00 : f32
    %25 = vector.broadcast %cst_26 : f32 to vector<8x16xf32>
    %26 = arith.maximumf %24, %25 : vector<8x16xf32>
    %c1_27 = arith.constant 1 : index
    %c1_28 = arith.constant 1 : index
    %c0_29 = arith.constant 0 : index
    %c0_30 = arith.constant 0 : index
    %27 = vector.load %arg1[%c1_27, %c1_28, %c0_29, %c0_30] : memref<6x6x8x12xbf16, #tpu.memory_space<vmem>>, vector<1x1x8x12xbf16>
    %28 = vector.shape_cast %27 : vector<1x1x8x12xbf16> to vector<8x12xbf16>
    %c0_31 = arith.constant 0 : index
    %c0_32 = arith.constant 0 : index
    %29 = vector.load %arg2[%c0_31, %c0_32] : memref<12x16xbf16, #tpu.memory_space<vmem>>, vector<12x16xbf16>
    %cst_33 = arith.constant dense<0.000000e+00> : vector<8x16xf32>
    %30 = tpu.matmul %28, %29, %cst_33 {dimension_numbers = #tpu.dot_dimension_numbers<[1], [0], [0], [1], [0, 0, 1, 1], [], []>} : vector<8x12xbf16>, vector<12x16xbf16>, vector<8x16xf32> -> vector<8x16xf32>
    %c0_34 = arith.constant 0 : index
    %c0_35 = arith.constant 0 : index
    %31 = vector.load %arg3[%c0_34, %c0_35] : memref<1x16xf32, #tpu.memory_space<vmem>>, vector<1x16xf32>
    %32 = vector.broadcast %31 : vector<1x16xf32> to vector<8x16xf32>
    %33 = arith.addf %30, %32 : vector<8x16xf32>
    %cst_36 = arith.constant 0.000000e+00 : f32
    %34 = vector.broadcast %cst_36 : f32 to vector<8x16xf32>
    %35 = arith.maximumf %33, %34 : vector<8x16xf32>
    %36 = arith.maximumf %8, %17 : vector<8x16xf32>
    %37 = arith.maximumf %26, %35 : vector<8x16xf32>
    %38 = arith.maximumf %36, %37 : vector<8x16xf32>
    %39 = arith.truncf %38 : vector<8x16xf32> to vector<8x16xbf16>
    %c0_37 = arith.constant 0 : index
    %c0_38 = arith.constant 0 : index
    %c0_39 = arith.constant 0 : index
    %c0_40 = arith.constant 0 : index
    %40 = vector.load %arg13[%c0_37, %c0_38, %c0_39, %c0_40] : memref<3x3x8x16xbf16, #tpu.memory_space<vmem>>, vector<1x1x8x16xbf16>
    %41 = vector.shape_cast %40 : vector<1x1x8x16xbf16> to vector<8x16xbf16>
    %42 = vector.shape_cast %39 : vector<8x16xbf16> to vector<1x1x8x16xbf16>
    tpu.vector_store %arg13[%c0_37, %c0_38, %c0_39, %c0_40], %42 {strides = array<i32>} : memref<3x3x8x16xbf16, #tpu.memory_space<vmem>>, vector<1x1x8x16xbf16>,
    %c0_41 = arith.constant 0 : index
    %c2 = arith.constant 2 : index
    %c0_42 = arith.constant 0 : index
    %c0_43 = arith.constant 0 : index
    %43 = vector.load %arg1[%c0_41, %c2, %c0_42, %c0_43] : memref<6x6x8x12xbf16, #tpu.memory_space<vmem>>, vector<1x1x8x12xbf16>
    %44 = vector.shape_cast %43 : vector<1x1x8x12xbf16> to vector<8x12xbf16>
    %c0_44 = arith.constant 0 : index
    %c0_45 = arith.constant 0 : index
    %45 = vector.load %arg2[%c0_44, %c0_45] : memref<12x16xbf16, #tpu.memory_space<vmem>>, vector<12x16xbf16>
    %cst_46 = arith.constant dense<0.000000e+00> : vector<8x16xf32>
    %46 = tpu.matmul %44, %45, %cst_46 {dimension_numbers = #tpu.dot_dimension_numbers<[1], [0], [0], [1], [0, 0, 1, 1], [], []>} : vector<8x12xbf16>, vector<12x16xbf16>, vector<8x16xf32> -> vector<8x16xf32>
    %c0_47 = arith.constant 0 : index
    %c0_48 = arith.constant 0 : index
    %47 = vector.load %arg3[%c0_47, %c0_48] : memref<1x16xf32, #tpu.memory_space<vmem>>, vector<1x16xf32>
    %48 = vector.broadcast %47 : vector<1x16xf32> to vector<8x16xf32>
    %49 = arith.addf %46, %48 : vector<8x16xf32>
    %cst_49 = arith.constant 0.000000e+00 : f32
    %50 = vector.broadcast %cst_49 : f32 to vector<8x16xf32>
    %51 = arith.maximumf %49, %50 : vector<8x16xf32>
    %c0_50 = arith.constant 0 : index
    %c3 = arith.constant 3 : index
    %c0_51 = arith.constant 0 : index
    %c0_52 = arith.constant 0 : index
    %52 = vector.load %arg1[%c0_50, %c3, %c0_51, %c0_52] : memref<6x6x8x12xbf16, #tpu.memory_space<vmem>>, vector<1x1x8x12xbf16>
    %53 = vector.shape_cast %52 : vector<1x1x8x12xbf16> to vector<8x12xbf16>
    %c0_53 = arith.constant 0 : index
    %c0_54 = arith.constant 0 : index
    %54 = vector.load %arg2[%c0_53, %c0_54] : memref<12x16xbf16, #tpu.memory_space<vmem>>, vector<12x16xbf16>
    %cst_55 = arith.constant dense<0.000000e+00> : vector<8x16xf32>
    %55 = tpu.matmul %53, %54, %cst_55 {dimension_numbers = #tpu.dot_dimension_numbers<[1], [0], [0], [1], [0, 0, 1, 1], [], []>} : vector<8x12xbf16>, vector<12x16xbf16>, vector<8x16xf32> -> vector<8x16xf32>
    %c0_56 = arith.constant 0 : index
    %c0_57 = arith.constant 0 : index
    %56 = vector.load %arg3[%c0_56, %c0_57] : memref<1x16xf32, #tpu.memory_space<vmem>>, vector<1x16xf32>
    %57 = vector.broadcast %56 : vector<1x16xf32> to vector<8x16xf32>
    %58 = arith.addf %55, %57 : vector<8x16xf32>
    %cst_58 = arith.constant 0.000000e+00 : f32
    %59 = vector.broadcast %cst_58 : f32 to vector<8x16xf32>
    %60 = arith.maximumf %58, %59 : vector<8x16xf32>
    %c1_59 = arith.constant 1 : index
    %c2_60 = arith.constant 2 : index
    %c0_61 = arith.constant 0 : index
    %c0_62 = arith.constant 0 : index
    %61 = vector.load %arg1[%c1_59, %c2_60, %c0_61, %c0_62] : memref<6x6x8x12xbf16, #tpu.memory_space<vmem>>, vector<1x1x8x12xbf16>
    %62 = vector.shape_cast %61 : vector<1x1x8x12xbf16> to vector<8x12xbf16>
    %c0_63 = arith.constant 0 : index
    %c0_64 = arith.constant 0 : index
    %63 = vector.load %arg2[%c0_63, %c0_64] : memref<12x16xbf16, #tpu.memory_space<vmem>>, vector<12x16xbf16>
    %cst_65 = arith.constant dense<0.000000e+00> : vector<8x16xf32>
    %64 = tpu.matmul %62, %63, %cst_65 {dimension_numbers = #tpu.dot_dimension_numbers<[1], [0], [0], [1], [0, 0, 1, 1], [], []>} : vector<8x12xbf16>, vector<12x16xbf16>, vector<8x16xf32> -> vector<8x16xf32>
    %c0_66 = arith.constant 0 : index
    %c0_67 = arith.constant 0 : index
    %65 = vector.load %arg3[%c0_66, %c0_67] : memref<1x16xf32, #tpu.memory_space<vmem>>, vector<1x16xf32>
    %66 = vector.broadcast %65 : vector<1x16xf32> to vector<8x16xf32>
    %67 = arith.addf %64, %66 : vector<8x16xf32>
    %cst_68 = arith.constant 0.000000e+00 : f32
    %68 = vector.broadcast %cst_68 : f32 to vector<8x16xf32>
    %69 = arith.maximumf %67, %68 : vector<8x16xf32>
    %c1_69 = arith.constant 1 : index
    %c3_70 = arith.constant 3 : index
    %c0_71 = arith.constant 0 : index
    %c0_72 = arith.constant 0 : index
    %70 = vector.load %arg1[%c1_69, %c3_70, %c0_71, %c0_72] : memref<6x6x8x12xbf16, #tpu.memory_space<vmem>>, vector<1x1x8x12xbf16>
    %71 = vector.shape_cast %70 : vector<1x1x8x12xbf16> to vector<8x12xbf16>
    %c0_73 = arith.constant 0 : index
    %c0_74 = arith.constant 0 : index
    %72 = vector.load %arg2[%c0_73, %c0_74] : memref<12x16xbf16, #tpu.memory_space<vmem>>, vector<12x16xbf16>
    %cst_75 = arith.constant dense<0.000000e+00> : vector<8x16xf32>
    %73 = tpu.matmul %71, %72, %cst_75 {dimension_numbers = #tpu.dot_dimension_numbers<[1], [0], [0], [1], [0, 0, 1, 1], [], []>} : vector<8x12xbf16>, vector<12x16xbf16>, vector<8x16xf32> -> vector<8x16xf32>
    %c0_76 = arith.constant 0 : index
    %c0_77 = arith.constant 0 : index
    %74 = vector.load %arg3[%c0_76, %c0_77] : memref<1x16xf32, #tpu.memory_space<vmem>>, vector<1x16xf32>
    %75 = vector.broadcast %74 : vector<1x16xf32> to vector<8x16xf32>
    %76 = arith.addf %73, %75 : vector<8x16xf32>
    %cst_78 = arith.constant 0.000000e+00 : f32
    %77 = vector.broadcast %cst_78 : f32 to vector<8x16xf32>
    %78 = arith.maximumf %76, %77 : vector<8x16xf32>
    %79 = arith.maximumf %51, %60 : vector<8x16xf32>
    %80 = arith.maximumf %69, %78 : vector<8x16xf32>
    %81 = arith.maximumf %79, %80 : vector<8x16xf32>
    %82 = arith.truncf %81 : vector<8x16xf32> to vector<8x16xbf16>
    %c0_79 = arith.constant 0 : index
    %c1_80 = arith.constant 1 : index
    %c0_81 = arith.constant 0 : index
    %c0_82 = arith.constant 0 : index
    %83 = vector.load %arg13[%c0_79, %c1_80, %c0_81, %c0_82] : memref<3x3x8x16xbf16, #tpu.memory_space<vmem>>, vector<1x1x8x16xbf16>
    %84 = vector.shape_cast %83 : vector<1x1x8x16xbf16> to vector<8x16xbf16>
    %85 = vector.shape_cast %82 : vector<8x16xbf16> to vector<1x1x8x16xbf16>
    tpu.vector_store %arg13[%c0_79, %c1_80, %c0_81, %c0_82], %85 {strides = array<i32>} : memref<3x3x8x16xbf16, #tpu.memory_space<vmem>>, vector<1x1x8x16xbf16>,
    %c0_83 = arith.constant 0 : index
    %c4 = arith.constant 4 : index
    %c0_84 = arith.constant 0 : index
    %c0_85 = arith.constant 0 : index
    %86 = vector.load %arg1[%c0_83, %c4, %c0_84, %c0_85] : memref<6x6x8x12xbf16, #tpu.memory_space<vmem>>, vector<1x1x8x12xbf16>
    %87 = vector.shape_cast %86 : vector<1x1x8x12xbf16> to vector<8x12xbf16>
    %c0_86 = arith.constant 0 : index
    %c0_87 = arith.constant 0 : index
    %88 = vector.load %arg2[%c0_86, %c0_87] : memref<12x16xbf16, #tpu.memory_space<vmem>>, vector<12x16xbf16>
    %cst_88 = arith.constant dense<0.000000e+00> : vector<8x16xf32>
    %89 = tpu.matmul %87, %88, %cst_88 {dimension_numbers = #tpu.dot_dimension_numbers<[1], [0], [0], [1], [0, 0, 1, 1], [], []>} : vector<8x12xbf16>, vector<12x16xbf16>, vector<8x16xf32> -> vector<8x16xf32>
    %c0_89 = arith.constant 0 : index
    %c0_90 = arith.constant 0 : index
    %90 = vector.load %arg3[%c0_89, %c0_90] : memref<1x16xf32, #tpu.memory_space<vmem>>, vector<1x16xf32>
    %91 = vector.broadcast %90 : vector<1x16xf32> to vector<8x16xf32>
    %92 = arith.addf %89, %91 : vector<8x16xf32>
    %cst_91 = arith.constant 0.000000e+00 : f32
    %93 = vector.broadcast %cst_91 : f32 to vector<8x16xf32>
    %94 = arith.maximumf %92, %93 : vector<8x16xf32>
    %c0_92 = arith.constant 0 : index
    %c5 = arith.constant 5 : index
    %c0_93 = arith.constant 0 : index
    %c0_94 = arith.constant 0 : index
    %95 = vector.load %arg1[%c0_92, %c5, %c0_93, %c0_94] : memref<6x6x8x12xbf16, #tpu.memory_space<vmem>>, vector<1x1x8x12xbf16>
    %96 = vector.shape_cast %95 : vector<1x1x8x12xbf16> to vector<8x12xbf16>
    %c0_95 = arith.constant 0 : index
    %c0_96 = arith.constant 0 : index
    %97 = vector.load %arg2[%c0_95, %c0_96] : memref<12x16xbf16, #tpu.memory_space<vmem>>, vector<12x16xbf16>
    %cst_97 = arith.constant dense<0.000000e+00> : vector<8x16xf32>
    %98 = tpu.matmul %96, %97, %cst_97 {dimension_numbers = #tpu.dot_dimension_numbers<[1], [0], [0], [1], [0, 0, 1, 1], [], []>} : vector<8x12xbf16>, vector<12x16xbf16>, vector<8x16xf32> -> vector<8x16xf32>
    %c0_98 = arith.constant 0 : index
    %c0_99 = arith.constant 0 : index
    %99 = vector.load %arg3[%c0_98, %c0_99] : memref<1x16xf32, #tpu.memory_space<vmem>>, vector<1x16xf32>
    %100 = vector.broadcast %99 : vector<1x16xf32> to vector<8x16xf32>
    %101 = arith.addf %98, %100 : vector<8x16xf32>
    %cst_100 = arith.constant 0.000000e+00 : f32
    %102 = vector.broadcast %cst_100 : f32 to vector<8x16xf32>
    %103 = arith.maximumf %101, %102 : vector<8x16xf32>
    %c1_101 = arith.constant 1 : index
    %c4_102 = arith.constant 4 : index
    %c0_103 = arith.constant 0 : index
    %c0_104 = arith.constant 0 : index
    %104 = vector.load %arg1[%c1_101, %c4_102, %c0_103, %c0_104] : memref<6x6x8x12xbf16, #tpu.memory_space<vmem>>, vector<1x1x8x12xbf16>
    %105 = vector.shape_cast %104 : vector<1x1x8x12xbf16> to vector<8x12xbf16>
    %c0_105 = arith.constant 0 : index
    %c0_106 = arith.constant 0 : index
    %106 = vector.load %arg2[%c0_105, %c0_106] : memref<12x16xbf16, #tpu.memory_space<vmem>>, vector<12x16xbf16>
    %cst_107 = arith.constant dense<0.000000e+00> : vector<8x16xf32>
    %107 = tpu.matmul %105, %106, %cst_107 {dimension_numbers = #tpu.dot_dimension_numbers<[1], [0], [0], [1], [0, 0, 1, 1], [], []>} : vector<8x12xbf16>, vector<12x16xbf16>, vector<8x16xf32> -> vector<8x16xf32>
    %c0_108 = arith.constant 0 : index
    %c0_109 = arith.constant 0 : index
    %108 = vector.load %arg3[%c0_108, %c0_109] : memref<1x16xf32, #tpu.memory_space<vmem>>, vector<1x16xf32>
    %109 = vector.broadcast %108 : vector<1x16xf32> to vector<8x16xf32>
    %110 = arith.addf %107, %109 : vector<8x16xf32>
    %cst_110 = arith.constant 0.000000e+00 : f32
    %111 = vector.broadcast %cst_110 : f32 to vector<8x16xf32>
    %112 = arith.maximumf %110, %111 : vector<8x16xf32>
    %c1_111 = arith.constant 1 : index
    %c5_112 = arith.constant 5 : index
    %c0_113 = arith.constant 0 : index
    %c0_114 = arith.constant 0 : index
    %113 = vector.load %arg1[%c1_111, %c5_112, %c0_113, %c0_114] : memref<6x6x8x12xbf16, #tpu.memory_space<vmem>>, vector<1x1x8x12xbf16>
    %114 = vector.shape_cast %113 : vector<1x1x8x12xbf16> to vector<8x12xbf16>
    %c0_115 = arith.constant 0 : index
    %c0_116 = arith.constant 0 : index
    %115 = vector.load %arg2[%c0_115, %c0_116] : memref<12x16xbf16, #tpu.memory_space<vmem>>, vector<12x16xbf16>
    %cst_117 = arith.constant dense<0.000000e+00> : vector<8x16xf32>
    %116 = tpu.matmul %114, %115, %cst_117 {dimension_numbers = #tpu.dot_dimension_numbers<[1], [0], [0], [1], [0, 0, 1, 1], [], []>} : vector<8x12xbf16>, vector<12x16xbf16>, vector<8x16xf32> -> vector<8x16xf32>
    %c0_118 = arith.constant 0 : index
    %c0_119 = arith.constant 0 : index
    %117 = vector.load %arg3[%c0_118, %c0_119] : memref<1x16xf32, #tpu.memory_space<vmem>>, vector<1x16xf32>
    %118 = vector.broadcast %117 : vector<1x16xf32> to vector<8x16xf32>
    %119 = arith.addf %116, %118 : vector<8x16xf32>
    %cst_120 = arith.constant 0.000000e+00 : f32
    %120 = vector.broadcast %cst_120 : f32 to vector<8x16xf32>
    %121 = arith.maximumf %119, %120 : vector<8x16xf32>
    %122 = arith.maximumf %94, %103 : vector<8x16xf32>
    %123 = arith.maximumf %112, %121 : vector<8x16xf32>
    %124 = arith.maximumf %122, %123 : vector<8x16xf32>
    %125 = arith.truncf %124 : vector<8x16xf32> to vector<8x16xbf16>
    %c0_121 = arith.constant 0 : index
    %c2_122 = arith.constant 2 : index
    %c0_123 = arith.constant 0 : index
    %c0_124 = arith.constant 0 : index
    %126 = vector.load %arg13[%c0_121, %c2_122, %c0_123, %c0_124] : memref<3x3x8x16xbf16, #tpu.memory_space<vmem>>, vector<1x1x8x16xbf16>
    %127 = vector.shape_cast %126 : vector<1x1x8x16xbf16> to vector<8x16xbf16>
    %128 = vector.shape_cast %125 : vector<8x16xbf16> to vector<1x1x8x16xbf16>
    tpu.vector_store %arg13[%c0_121, %c2_122, %c0_123, %c0_124], %128 {strides = array<i32>} : memref<3x3x8x16xbf16, #tpu.memory_space<vmem>>, vector<1x1x8x16xbf16>,
    %c2_125 = arith.constant 2 : index
    %c0_126 = arith.constant 0 : index
    %c0_127 = arith.constant 0 : index
    %c0_128 = arith.constant 0 : index
    %129 = vector.load %arg1[%c2_125, %c0_126, %c0_127, %c0_128] : memref<6x6x8x12xbf16, #tpu.memory_space<vmem>>, vector<1x1x8x12xbf16>
    %130 = vector.shape_cast %129 : vector<1x1x8x12xbf16> to vector<8x12xbf16>
    %c0_129 = arith.constant 0 : index
    %c0_130 = arith.constant 0 : index
    %131 = vector.load %arg2[%c0_129, %c0_130] : memref<12x16xbf16, #tpu.memory_space<vmem>>, vector<12x16xbf16>
    %cst_131 = arith.constant dense<0.000000e+00> : vector<8x16xf32>
    %132 = tpu.matmul %130, %131, %cst_131 {dimension_numbers = #tpu.dot_dimension_numbers<[1], [0], [0], [1], [0, 0, 1, 1], [], []>} : vector<8x12xbf16>, vector<12x16xbf16>, vector<8x16xf32> -> vector<8x16xf32>
    %c0_132 = arith.constant 0 : index
    %c0_133 = arith.constant 0 : index
    %133 = vector.load %arg3[%c0_132, %c0_133] : memref<1x16xf32, #tpu.memory_space<vmem>>, vector<1x16xf32>
    %134 = vector.broadcast %133 : vector<1x16xf32> to vector<8x16xf32>
    %135 = arith.addf %132, %134 : vector<8x16xf32>
    %cst_134 = arith.constant 0.000000e+00 : f32
    %136 = vector.broadcast %cst_134 : f32 to vector<8x16xf32>
    %137 = arith.maximumf %135, %136 : vector<8x16xf32>
    %c2_135 = arith.constant 2 : index
    %c1_136 = arith.constant 1 : index
    %c0_137 = arith.constant 0 : index
    %c0_138 = arith.constant 0 : index
    %138 = vector.load %arg1[%c2_135, %c1_136, %c0_137, %c0_138] : memref<6x6x8x12xbf16, #tpu.memory_space<vmem>>, vector<1x1x8x12xbf16>
    %139 = vector.shape_cast %138 : vector<1x1x8x12xbf16> to vector<8x12xbf16>
    %c0_139 = arith.constant 0 : index
    %c0_140 = arith.constant 0 : index
    %140 = vector.load %arg2[%c0_139, %c0_140] : memref<12x16xbf16, #tpu.memory_space<vmem>>, vector<12x16xbf16>
    %cst_141 = arith.constant dense<0.000000e+00> : vector<8x16xf32>
    %141 = tpu.matmul %139, %140, %cst_141 {dimension_numbers = #tpu.dot_dimension_numbers<[1], [0], [0], [1], [0, 0, 1, 1], [], []>} : vector<8x12xbf16>, vector<12x16xbf16>, vector<8x16xf32> -> vector<8x16xf32>
    %c0_142 = arith.constant 0 : index
    %c0_143 = arith.constant 0 : index
    %142 = vector.load %arg3[%c0_142, %c0_143] : memref<1x16xf32, #tpu.memory_space<vmem>>, vector<1x16xf32>
    %143 = vector.broadcast %142 : vector<1x16xf32> to vector<8x16xf32>
    %144 = arith.addf %141, %143 : vector<8x16xf32>
    %cst_144 = arith.constant 0.000000e+00 : f32
    %145 = vector.broadcast %cst_144 : f32 to vector<8x16xf32>
    %146 = arith.maximumf %144, %145 : vector<8x16xf32>
    %c3_145 = arith.constant 3 : index
    %c0_146 = arith.constant 0 : index
    %c0_147 = arith.constant 0 : index
    %c0_148 = arith.constant 0 : index
    %147 = vector.load %arg1[%c3_145, %c0_146, %c0_147, %c0_148] : memref<6x6x8x12xbf16, #tpu.memory_space<vmem>>, vector<1x1x8x12xbf16>
    %148 = vector.shape_cast %147 : vector<1x1x8x12xbf16> to vector<8x12xbf16>
    %c0_149 = arith.constant 0 : index
    %c0_150 = arith.constant 0 : index
    %149 = vector.load %arg2[%c0_149, %c0_150] : memref<12x16xbf16, #tpu.memory_space<vmem>>, vector<12x16xbf16>
    %cst_151 = arith.constant dense<0.000000e+00> : vector<8x16xf32>
    %150 = tpu.matmul %148, %149, %cst_151 {dimension_numbers = #tpu.dot_dimension_numbers<[1], [0], [0], [1], [0, 0, 1, 1], [], []>} : vector<8x12xbf16>, vector<12x16xbf16>, vector<8x16xf32> -> vector<8x16xf32>
    %c0_152 = arith.constant 0 : index
    %c0_153 = arith.constant 0 : index
    %151 = vector.load %arg3[%c0_152, %c0_153] : memref<1x16xf32, #tpu.memory_space<vmem>>, vector<1x16xf32>
    %152 = vector.broadcast %151 : vector<1x16xf32> to vector<8x16xf32>
    %153 = arith.addf %150, %152 : vector<8x16xf32>
    %cst_154 = arith.constant 0.000000e+00 : f32
    %154 = vector.broadcast %cst_154 : f32 to vector<8x16xf32>
    %155 = arith.maximumf %153, %154 : vector<8x16xf32>
    %c3_155 = arith.constant 3 : index
    %c1_156 = arith.constant 1 : index
    %c0_157 = arith.constant 0 : index
    %c0_158 = arith.constant 0 : index
    %156 = vector.load %arg1[%c3_155, %c1_156, %c0_157, %c0_158] : memref<6x6x8x12xbf16, #tpu.memory_space<vmem>>, vector<1x1x8x12xbf16>
    %157 = vector.shape_cast %156 : vector<1x1x8x12xbf16> to vector<8x12xbf16>
    %c0_159 = arith.constant 0 : index
    %c0_160 = arith.constant 0 : index
    %158 = vector.load %arg2[%c0_159, %c0_160] : memref<12x16xbf16, #tpu.memory_space<vmem>>, vector<12x16xbf16>
    %cst_161 = arith.constant dense<0.000000e+00> : vector<8x16xf32>
    %159 = tpu.matmul %157, %158, %cst_161 {dimension_numbers = #tpu.dot_dimension_numbers<[1], [0], [0], [1], [0, 0, 1, 1], [], []>} : vector<8x12xbf16>, vector<12x16xbf16>, vector<8x16xf32> -> vector<8x16xf32>
    %c0_162 = arith.constant 0 : index
    %c0_163 = arith.constant 0 : index
    %160 = vector.load %arg3[%c0_162, %c0_163] : memref<1x16xf32, #tpu.memory_space<vmem>>, vector<1x16xf32>
    %161 = vector.broadcast %160 : vector<1x16xf32> to vector<8x16xf32>
    %162 = arith.addf %159, %161 : vector<8x16xf32>
    %cst_164 = arith.constant 0.000000e+00 : f32
    %163 = vector.broadcast %cst_164 : f32 to vector<8x16xf32>
    %164 = arith.maximumf %162, %163 : vector<8x16xf32>
    %165 = arith.maximumf %137, %146 : vector<8x16xf32>
    %166 = arith.maximumf %155, %164 : vector<8x16xf32>
    %167 = arith.maximumf %165, %166 : vector<8x16xf32>
    %168 = arith.truncf %167 : vector<8x16xf32> to vector<8x16xbf16>
    %c1_165 = arith.constant 1 : index
    %c0_166 = arith.constant 0 : index
    %c0_167 = arith.constant 0 : index
    %c0_168 = arith.constant 0 : index
    %169 = vector.load %arg13[%c1_165, %c0_166, %c0_167, %c0_168] : memref<3x3x8x16xbf16, #tpu.memory_space<vmem>>, vector<1x1x8x16xbf16>
    %170 = vector.shape_cast %169 : vector<1x1x8x16xbf16> to vector<8x16xbf16>
    %171 = vector.shape_cast %168 : vector<8x16xbf16> to vector<1x1x8x16xbf16>
    tpu.vector_store %arg13[%c1_165, %c0_166, %c0_167, %c0_168], %171 {strides = array<i32>} : memref<3x3x8x16xbf16, #tpu.memory_space<vmem>>, vector<1x1x8x16xbf16>,
    %c2_169 = arith.constant 2 : index
    %c2_170 = arith.constant 2 : index
    %c0_171 = arith.constant 0 : index
    %c0_172 = arith.constant 0 : index
    %172 = vector.load %arg1[%c2_169, %c2_170, %c0_171, %c0_172] : memref<6x6x8x12xbf16, #tpu.memory_space<vmem>>, vector<1x1x8x12xbf16>
    %173 = vector.shape_cast %172 : vector<1x1x8x12xbf16> to vector<8x12xbf16>
    %c0_173 = arith.constant 0 : index
    %c0_174 = arith.constant 0 : index
    %174 = vector.load %arg2[%c0_173, %c0_174] : memref<12x16xbf16, #tpu.memory_space<vmem>>, vector<12x16xbf16>
    %cst_175 = arith.constant dense<0.000000e+00> : vector<8x16xf32>
    %175 = tpu.matmul %173, %174, %cst_175 {dimension_numbers = #tpu.dot_dimension_numbers<[1], [0], [0], [1], [0, 0, 1, 1], [], []>} : vector<8x12xbf16>, vector<12x16xbf16>, vector<8x16xf32> -> vector<8x16xf32>
    %c0_176 = arith.constant 0 : index
    %c0_177 = arith.constant 0 : index
    %176 = vector.load %arg3[%c0_176, %c0_177] : memref<1x16xf32, #tpu.memory_space<vmem>>, vector<1x16xf32>
    %177 = vector.broadcast %176 : vector<1x16xf32> to vector<8x16xf32>
    %178 = arith.addf %175, %177 : vector<8x16xf32>
    %cst_178 = arith.constant 0.000000e+00 : f32
    %179 = vector.broadcast %cst_178 : f32 to vector<8x16xf32>
    %180 = arith.maximumf %178, %179 : vector<8x16xf32>
    %c2_179 = arith.constant 2 : index
    %c3_180 = arith.constant 3 : index
    %c0_181 = arith.constant 0 : index
    %c0_182 = arith.constant 0 : index
    %181 = vector.load %arg1[%c2_179, %c3_180, %c0_181, %c0_182] : memref<6x6x8x12xbf16, #tpu.memory_space<vmem>>, vector<1x1x8x12xbf16>
    %182 = vector.shape_cast %181 : vector<1x1x8x12xbf16> to vector<8x12xbf16>
    %c0_183 = arith.constant 0 : index
    %c0_184 = arith.constant 0 : index
    %183 = vector.load %arg2[%c0_183, %c0_184] : memref<12x16xbf16, #tpu.memory_space<vmem>>, vector<12x16xbf16>
    %cst_185 = arith.constant dense<0.000000e+00> : vector<8x16xf32>
    %184 = tpu.matmul %182, %183, %cst_185 {dimension_numbers = #tpu.dot_dimension_numbers<[1], [0], [0], [1], [0, 0, 1, 1], [], []>} : vector<8x12xbf16>, vector<12x16xbf16>, vector<8x16xf32> -> vector<8x16xf32>
    %c0_186 = arith.constant 0 : index
    %c0_187 = arith.constant 0 : index
    %185 = vector.load %arg3[%c0_186, %c0_187] : memref<1x16xf32, #tpu.memory_space<vmem>>, vector<1x16xf32>
    %186 = vector.broadcast %185 : vector<1x16xf32> to vector<8x16xf32>
    %187 = arith.addf %184, %186 : vector<8x16xf32>
    %cst_188 = arith.constant 0.000000e+00 : f32
    %188 = vector.broadcast %cst_188 : f32 to vector<8x16xf32>
    %189 = arith.maximumf %187, %188 : vector<8x16xf32>
    %c3_189 = arith.constant 3 : index
    %c2_190 = arith.constant 2 : index
    %c0_191 = arith.constant 0 : index
    %c0_192 = arith.constant 0 : index
    %190 = vector.load %arg1[%c3_189, %c2_190, %c0_191, %c0_192] : memref<6x6x8x12xbf16, #tpu.memory_space<vmem>>, vector<1x1x8x12xbf16>
    %191 = vector.shape_cast %190 : vector<1x1x8x12xbf16> to vector<8x12xbf16>
    %c0_193 = arith.constant 0 : index
    %c0_194 = arith.constant 0 : index
    %192 = vector.load %arg2[%c0_193, %c0_194] : memref<12x16xbf16, #tpu.memory_space<vmem>>, vector<12x16xbf16>
    %cst_195 = arith.constant dense<0.000000e+00> : vector<8x16xf32>
    %193 = tpu.matmul %191, %192, %cst_195 {dimension_numbers = #tpu.dot_dimension_numbers<[1], [0], [0], [1], [0, 0, 1, 1], [], []>} : vector<8x12xbf16>, vector<12x16xbf16>, vector<8x16xf32> -> vector<8x16xf32>
    %c0_196 = arith.constant 0 : index
    %c0_197 = arith.constant 0 : index
    %194 = vector.load %arg3[%c0_196, %c0_197] : memref<1x16xf32, #tpu.memory_space<vmem>>, vector<1x16xf32>
    %195 = vector.broadcast %194 : vector<1x16xf32> to vector<8x16xf32>
    %196 = arith.addf %193, %195 : vector<8x16xf32>
    %cst_198 = arith.constant 0.000000e+00 : f32
    %197 = vector.broadcast %cst_198 : f32 to vector<8x16xf32>
    %198 = arith.maximumf %196, %197 : vector<8x16xf32>
    %c3_199 = arith.constant 3 : index
    %c3_200 = arith.constant 3 : index
    %c0_201 = arith.constant 0 : index
    %c0_202 = arith.constant 0 : index
    %199 = vector.load %arg1[%c3_199, %c3_200, %c0_201, %c0_202] : memref<6x6x8x12xbf16, #tpu.memory_space<vmem>>, vector<1x1x8x12xbf16>
    %200 = vector.shape_cast %199 : vector<1x1x8x12xbf16> to vector<8x12xbf16>
    %c0_203 = arith.constant 0 : index
    %c0_204 = arith.constant 0 : index
    %201 = vector.load %arg2[%c0_203, %c0_204] : memref<12x16xbf16, #tpu.memory_space<vmem>>, vector<12x16xbf16>
    %cst_205 = arith.constant dense<0.000000e+00> : vector<8x16xf32>
    %202 = tpu.matmul %200, %201, %cst_205 {dimension_numbers = #tpu.dot_dimension_numbers<[1], [0], [0], [1], [0, 0, 1, 1], [], []>} : vector<8x12xbf16>, vector<12x16xbf16>, vector<8x16xf32> -> vector<8x16xf32>
    %c0_206 = arith.constant 0 : index
    %c0_207 = arith.constant 0 : index
    %203 = vector.load %arg3[%c0_206, %c0_207] : memref<1x16xf32, #tpu.memory_space<vmem>>, vector<1x16xf32>
    %204 = vector.broadcast %203 : vector<1x16xf32> to vector<8x16xf32>
    %205 = arith.addf %202, %204 : vector<8x16xf32>
    %cst_208 = arith.constant 0.000000e+00 : f32
    %206 = vector.broadcast %cst_208 : f32 to vector<8x16xf32>
    %207 = arith.maximumf %205, %206 : vector<8x16xf32>
    %208 = arith.maximumf %180, %189 : vector<8x16xf32>
    %209 = arith.maximumf %198, %207 : vector<8x16xf32>
    %210 = arith.maximumf %208, %209 : vector<8x16xf32>
    %211 = arith.truncf %210 : vector<8x16xf32> to vector<8x16xbf16>
    %c1_209 = arith.constant 1 : index
    %c1_210 = arith.constant 1 : index
    %c0_211 = arith.constant 0 : index
    %c0_212 = arith.constant 0 : index
    %212 = vector.load %arg13[%c1_209, %c1_210, %c0_211, %c0_212] : memref<3x3x8x16xbf16, #tpu.memory_space<vmem>>, vector<1x1x8x16xbf16>
    %213 = vector.shape_cast %212 : vector<1x1x8x16xbf16> to vector<8x16xbf16>
    %214 = vector.shape_cast %211 : vector<8x16xbf16> to vector<1x1x8x16xbf16>
    tpu.vector_store %arg13[%c1_209, %c1_210, %c0_211, %c0_212], %214 {strides = array<i32>} : memref<3x3x8x16xbf16, #tpu.memory_space<vmem>>, vector<1x1x8x16xbf16>,
    %c2_213 = arith.constant 2 : index
    %c4_214 = arith.constant 4 : index
    %c0_215 = arith.constant 0 : index
    %c0_216 = arith.constant 0 : index
    %215 = vector.load %arg1[%c2_213, %c4_214, %c0_215, %c0_216] : memref<6x6x8x12xbf16, #tpu.memory_space<vmem>>, vector<1x1x8x12xbf16>
    %216 = vector.shape_cast %215 : vector<1x1x8x12xbf16> to vector<8x12xbf16>
    %c0_217 = arith.constant 0 : index
    %c0_218 = arith.constant 0 : index
    %217 = vector.load %arg2[%c0_217, %c0_218] : memref<12x16xbf16, #tpu.memory_space<vmem>>, vector<12x16xbf16>
    %cst_219 = arith.constant dense<0.000000e+00> : vector<8x16xf32>
    %218 = tpu.matmul %216, %217, %cst_219 {dimension_numbers = #tpu.dot_dimension_numbers<[1], [0], [0], [1], [0, 0, 1, 1], [], []>} : vector<8x12xbf16>, vector<12x16xbf16>, vector<8x16xf32> -> vector<8x16xf32>
    %c0_220 = arith.constant 0 : index
    %c0_221 = arith.constant 0 : index
    %219 = vector.load %arg3[%c0_220, %c0_221] : memref<1x16xf32, #tpu.memory_space<vmem>>, vector<1x16xf32>
    %220 = vector.broadcast %219 : vector<1x16xf32> to vector<8x16xf32>
    %221 = arith.addf %218, %220 : vector<8x16xf32>
    %cst_222 = arith.constant 0.000000e+00 : f32
    %222 = vector.broadcast %cst_222 : f32 to vector<8x16xf32>
    %223 = arith.maximumf %221, %222 : vector<8x16xf32>
    %c2_223 = arith.constant 2 : index
    %c5_224 = arith.constant 5 : index
    %c0_225 = arith.constant 0 : index
    %c0_226 = arith.constant 0 : index
    %224 = vector.load %arg1[%c2_223, %c5_224, %c0_225, %c0_226] : memref<6x6x8x12xbf16, #tpu.memory_space<vmem>>, vector<1x1x8x12xbf16>
    %225 = vector.shape_cast %224 : vector<1x1x8x12xbf16> to vector<8x12xbf16>
    %c0_227 = arith.constant 0 : index
    %c0_228 = arith.constant 0 : index
    %226 = vector.load %arg2[%c0_227, %c0_228] : memref<12x16xbf16, #tpu.memory_space<vmem>>, vector<12x16xbf16>
    %cst_229 = arith.constant dense<0.000000e+00> : vector<8x16xf32>
    %227 = tpu.matmul %225, %226, %cst_229 {dimension_numbers = #tpu.dot_dimension_numbers<[1], [0], [0], [1], [0, 0, 1, 1], [], []>} : vector<8x12xbf16>, vector<12x16xbf16>, vector<8x16xf32> -> vector<8x16xf32>
    %c0_230 = arith.constant 0 : index
    %c0_231 = arith.constant 0 : index
    %228 = vector.load %arg3[%c0_230, %c0_231] : memref<1x16xf32, #tpu.memory_space<vmem>>, vector<1x16xf32>
    %229 = vector.broadcast %228 : vector<1x16xf32> to vector<8x16xf32>
    %230 = arith.addf %227, %229 : vector<8x16xf32>
    %cst_232 = arith.constant 0.000000e+00 : f32
    %231 = vector.broadcast %cst_232 : f32 to vector<8x16xf32>
    %232 = arith.maximumf %230, %231 : vector<8x16xf32>
    %c3_233 = arith.constant 3 : index
    %c4_234 = arith.constant 4 : index
    %c0_235 = arith.constant 0 : index
    %c0_236 = arith.constant 0 : index
    %233 = vector.load %arg1[%c3_233, %c4_234, %c0_235, %c0_236] : memref<6x6x8x12xbf16, #tpu.memory_space<vmem>>, vector<1x1x8x12xbf16>
    %234 = vector.shape_cast %233 : vector<1x1x8x12xbf16> to vector<8x12xbf16>
    %c0_237 = arith.constant 0 : index
    %c0_238 = arith.constant 0 : index
    %235 = vector.load %arg2[%c0_237, %c0_238] : memref<12x16xbf16, #tpu.memory_space<vmem>>, vector<12x16xbf16>
    %cst_239 = arith.constant dense<0.000000e+00> : vector<8x16xf32>
    %236 = tpu.matmul %234, %235, %cst_239 {dimension_numbers = #tpu.dot_dimension_numbers<[1], [0], [0], [1], [0, 0, 1, 1], [], []>} : vector<8x12xbf16>, vector<12x16xbf16>, vector<8x16xf32> -> vector<8x16xf32>
    %c0_240 = arith.constant 0 : index
    %c0_241 = arith.constant 0 : index
    %237 = vector.load %arg3[%c0_240, %c0_241] : memref<1x16xf32, #tpu.memory_space<vmem>>, vector<1x16xf32>
    %238 = vector.broadcast %237 : vector<1x16xf32> to vector<8x16xf32>
    %239 = arith.addf %236, %238 : vector<8x16xf32>
    %cst_242 = arith.constant 0.000000e+00 : f32
    %240 = vector.broadcast %cst_242 : f32 to vector<8x16xf32>
    %241 = arith.maximumf %239, %240 : vector<8x16xf32>
    %c3_243 = arith.constant 3 : index
    %c5_244 = arith.constant 5 : index
    %c0_245 = arith.constant 0 : index
    %c0_246 = arith.constant 0 : index
    %242 = vector.load %arg1[%c3_243, %c5_244, %c0_245, %c0_246] : memref<6x6x8x12xbf16, #tpu.memory_space<vmem>>, vector<1x1x8x12xbf16>
    %243 = vector.shape_cast %242 : vector<1x1x8x12xbf16> to vector<8x12xbf16>
    %c0_247 = arith.constant 0 : index
    %c0_248 = arith.constant 0 : index
    %244 = vector.load %arg2[%c0_247, %c0_248] : memref<12x16xbf16, #tpu.memory_space<vmem>>, vector<12x16xbf16>
    %cst_249 = arith.constant dense<0.000000e+00> : vector<8x16xf32>
    %245 = tpu.matmul %243, %244, %cst_249 {dimension_numbers = #tpu.dot_dimension_numbers<[1], [0], [0], [1], [0, 0, 1, 1], [], []>} : vector<8x12xbf16>, vector<12x16xbf16>, vector<8x16xf32> -> vector<8x16xf32>
    %c0_250 = arith.constant 0 : index
    %c0_251 = arith.constant 0 : index
    %246 = vector.load %arg3[%c0_250, %c0_251] : memref<1x16xf32, #tpu.memory_space<vmem>>, vector<1x16xf32>
    %247 = vector.broadcast %246 : vector<1x16xf32> to vector<8x16xf32>
    %248 = arith.addf %245, %247 : vector<8x16xf32>
    %cst_252 = arith.constant 0.000000e+00 : f32
    %249 = vector.broadcast %cst_252 : f32 to vector<8x16xf32>
    %250 = arith.maximumf %248, %249 : vector<8x16xf32>
    %251 = arith.maximumf %223, %232 : vector<8x16xf32>
    %252 = arith.maximumf %241, %250 : vector<8x16xf32>
    %253 = arith.maximumf %251, %252 : vector<8x16xf32>
    %254 = arith.truncf %253 : vector<8x16xf32> to vector<8x16xbf16>
    %c1_253 = arith.constant 1 : index
    %c2_254 = arith.constant 2 : index
    %c0_255 = arith.constant 0 : index
    %c0_256 = arith.constant 0 : index
    %255 = vector.load %arg13[%c1_253, %c2_254, %c0_255, %c0_256] : memref<3x3x8x16xbf16, #tpu.memory_space<vmem>>, vector<1x1x8x16xbf16>
    %256 = vector.shape_cast %255 : vector<1x1x8x16xbf16> to vector<8x16xbf16>
    %257 = vector.shape_cast %254 : vector<8x16xbf16> to vector<1x1x8x16xbf16>
    tpu.vector_store %arg13[%c1_253, %c2_254, %c0_255, %c0_256], %257 {strides = array<i32>} : memref<3x3x8x16xbf16, #tpu.memory_space<vmem>>, vector<1x1x8x16xbf16>,
    %c4_257 = arith.constant 4 : index
    %c0_258 = arith.constant 0 : index
    %c0_259 = arith.constant 0 : index
    %c0_260 = arith.constant 0 : index
    %258 = vector.load %arg1[%c4_257, %c0_258, %c0_259, %c0_260] : memref<6x6x8x12xbf16, #tpu.memory_space<vmem>>, vector<1x1x8x12xbf16>
    %259 = vector.shape_cast %258 : vector<1x1x8x12xbf16> to vector<8x12xbf16>
    %c0_261 = arith.constant 0 : index
    %c0_262 = arith.constant 0 : index
    %260 = vector.load %arg2[%c0_261, %c0_262] : memref<12x16xbf16, #tpu.memory_space<vmem>>, vector<12x16xbf16>
    %cst_263 = arith.constant dense<0.000000e+00> : vector<8x16xf32>
    %261 = tpu.matmul %259, %260, %cst_263 {dimension_numbers = #tpu.dot_dimension_numbers<[1], [0], [0], [1], [0, 0, 1, 1], [], []>} : vector<8x12xbf16>, vector<12x16xbf16>, vector<8x16xf32> -> vector<8x16xf32>
    %c0_264 = arith.constant 0 : index
    %c0_265 = arith.constant 0 : index
    %262 = vector.load %arg3[%c0_264, %c0_265] : memref<1x16xf32, #tpu.memory_space<vmem>>, vector<1x16xf32>
    %263 = vector.broadcast %262 : vector<1x16xf32> to vector<8x16xf32>
    %264 = arith.addf %261, %263 : vector<8x16xf32>
    %cst_266 = arith.constant 0.000000e+00 : f32
    %265 = vector.broadcast %cst_266 : f32 to vector<8x16xf32>
    %266 = arith.maximumf %264, %265 : vector<8x16xf32>
    %c4_267 = arith.constant 4 : index
    %c1_268 = arith.constant 1 : index
    %c0_269 = arith.constant 0 : index
    %c0_270 = arith.constant 0 : index
    %267 = vector.load %arg1[%c4_267, %c1_268, %c0_269, %c0_270] : memref<6x6x8x12xbf16, #tpu.memory_space<vmem>>, vector<1x1x8x12xbf16>
    %268 = vector.shape_cast %267 : vector<1x1x8x12xbf16> to vector<8x12xbf16>
    %c0_271 = arith.constant 0 : index
    %c0_272 = arith.constant 0 : index
    %269 = vector.load %arg2[%c0_271, %c0_272] : memref<12x16xbf16, #tpu.memory_space<vmem>>, vector<12x16xbf16>
    %cst_273 = arith.constant dense<0.000000e+00> : vector<8x16xf32>
    %270 = tpu.matmul %268, %269, %cst_273 {dimension_numbers = #tpu.dot_dimension_numbers<[1], [0], [0], [1], [0, 0, 1, 1], [], []>} : vector<8x12xbf16>, vector<12x16xbf16>, vector<8x16xf32> -> vector<8x16xf32>
    %c0_274 = arith.constant 0 : index
    %c0_275 = arith.constant 0 : index
    %271 = vector.load %arg3[%c0_274, %c0_275] : memref<1x16xf32, #tpu.memory_space<vmem>>, vector<1x16xf32>
    %272 = vector.broadcast %271 : vector<1x16xf32> to vector<8x16xf32>
    %273 = arith.addf %270, %272 : vector<8x16xf32>
    %cst_276 = arith.constant 0.000000e+00 : f32
    %274 = vector.broadcast %cst_276 : f32 to vector<8x16xf32>
    %275 = arith.maximumf %273, %274 : vector<8x16xf32>
    %c5_277 = arith.constant 5 : index
    %c0_278 = arith.constant 0 : index
    %c0_279 = arith.constant 0 : index
    %c0_280 = arith.constant 0 : index
    %276 = vector.load %arg1[%c5_277, %c0_278, %c0_279, %c0_280] : memref<6x6x8x12xbf16, #tpu.memory_space<vmem>>, vector<1x1x8x12xbf16>
    %277 = vector.shape_cast %276 : vector<1x1x8x12xbf16> to vector<8x12xbf16>
    %c0_281 = arith.constant 0 : index
    %c0_282 = arith.constant 0 : index
    %278 = vector.load %arg2[%c0_281, %c0_282] : memref<12x16xbf16, #tpu.memory_space<vmem>>, vector<12x16xbf16>
    %cst_283 = arith.constant dense<0.000000e+00> : vector<8x16xf32>
    %279 = tpu.matmul %277, %278, %cst_283 {dimension_numbers = #tpu.dot_dimension_numbers<[1], [0], [0], [1], [0, 0, 1, 1], [], []>} : vector<8x12xbf16>, vector<12x16xbf16>, vector<8x16xf32> -> vector<8x16xf32>
    %c0_284 = arith.constant 0 : index
    %c0_285 = arith.constant 0 : index
    %280 = vector.load %arg3[%c0_284, %c0_285] : memref<1x16xf32, #tpu.memory_space<vmem>>, vector<1x16xf32>
    %281 = vector.broadcast %280 : vector<1x16xf32> to vector<8x16xf32>
    %282 = arith.addf %279, %281 : vector<8x16xf32>
    %cst_286 = arith.constant 0.000000e+00 : f32
    %283 = vector.broadcast %cst_286 : f32 to vector<8x16xf32>
    %284 = arith.maximumf %282, %283 : vector<8x16xf32>
    %c5_287 = arith.constant 5 : index
    %c1_288 = arith.constant 1 : index
    %c0_289 = arith.constant 0 : index
    %c0_290 = arith.constant 0 : index
    %285 = vector.load %arg1[%c5_287, %c1_288, %c0_289, %c0_290] : memref<6x6x8x12xbf16, #tpu.memory_space<vmem>>, vector<1x1x8x12xbf16>
    %286 = vector.shape_cast %285 : vector<1x1x8x12xbf16> to vector<8x12xbf16>
    %c0_291 = arith.constant 0 : index
    %c0_292 = arith.constant 0 : index
    %287 = vector.load %arg2[%c0_291, %c0_292] : memref<12x16xbf16, #tpu.memory_space<vmem>>, vector<12x16xbf16>
    %cst_293 = arith.constant dense<0.000000e+00> : vector<8x16xf32>
    %288 = tpu.matmul %286, %287, %cst_293 {dimension_numbers = #tpu.dot_dimension_numbers<[1], [0], [0], [1], [0, 0, 1, 1], [], []>} : vector<8x12xbf16>, vector<12x16xbf16>, vector<8x16xf32> -> vector<8x16xf32>
    %c0_294 = arith.constant 0 : index
    %c0_295 = arith.constant 0 : index
    %289 = vector.load %arg3[%c0_294, %c0_295] : memref<1x16xf32, #tpu.memory_space<vmem>>, vector<1x16xf32>
    %290 = vector.broadcast %289 : vector<1x16xf32> to vector<8x16xf32>
    %291 = arith.addf %288, %290 : vector<8x16xf32>
    %cst_296 = arith.constant 0.000000e+00 : f32
    %292 = vector.broadcast %cst_296 : f32 to vector<8x16xf32>
    %293 = arith.maximumf %291, %292 : vector<8x16xf32>
    %294 = arith.maximumf %266, %275 : vector<8x16xf32>
    %295 = arith.maximumf %284, %293 : vector<8x16xf32>
    %296 = arith.maximumf %294, %295 : vector<8x16xf32>
    %297 = arith.truncf %296 : vector<8x16xf32> to vector<8x16xbf16>
    %c2_297 = arith.constant 2 : index
    %c0_298 = arith.constant 0 : index
    %c0_299 = arith.constant 0 : index
    %c0_300 = arith.constant 0 : index
    %298 = vector.load %arg13[%c2_297, %c0_298, %c0_299, %c0_300] : memref<3x3x8x16xbf16, #tpu.memory_space<vmem>>, vector<1x1x8x16xbf16>
    %299 = vector.shape_cast %298 : vector<1x1x8x16xbf16> to vector<8x16xbf16>
    %300 = vector.shape_cast %297 : vector<8x16xbf16> to vector<1x1x8x16xbf16>
    tpu.vector_store %arg13[%c2_297, %c0_298, %c0_299, %c0_300], %300 {strides = array<i32>} : memref<3x3x8x16xbf16, #tpu.memory_space<vmem>>, vector<1x1x8x16xbf16>,
    %c4_301 = arith.constant 4 : index
    %c2_302 = arith.constant 2 : index
    %c0_303 = arith.constant 0 : index
    %c0_304 = arith.constant 0 : index
    %301 = vector.load %arg1[%c4_301, %c2_302, %c0_303, %c0_304] : memref<6x6x8x12xbf16, #tpu.memory_space<vmem>>, vector<1x1x8x12xbf16>
    %302 = vector.shape_cast %301 : vector<1x1x8x12xbf16> to vector<8x12xbf16>
    %c0_305 = arith.constant 0 : index
    %c0_306 = arith.constant 0 : index
    %303 = vector.load %arg2[%c0_305, %c0_306] : memref<12x16xbf16, #tpu.memory_space<vmem>>, vector<12x16xbf16>
    %cst_307 = arith.constant dense<0.000000e+00> : vector<8x16xf32>
    %304 = tpu.matmul %302, %303, %cst_307 {dimension_numbers = #tpu.dot_dimension_numbers<[1], [0], [0], [1], [0, 0, 1, 1], [], []>} : vector<8x12xbf16>, vector<12x16xbf16>, vector<8x16xf32> -> vector<8x16xf32>
    %c0_308 = arith.constant 0 : index
    %c0_309 = arith.constant 0 : index
    %305 = vector.load %arg3[%c0_308, %c0_309] : memref<1x16xf32, #tpu.memory_space<vmem>>, vector<1x16xf32>
    %306 = vector.broadcast %305 : vector<1x16xf32> to vector<8x16xf32>
    %307 = arith.addf %304, %306 : vector<8x16xf32>
    %cst_310 = arith.constant 0.000000e+00 : f32
    %308 = vector.broadcast %cst_310 : f32 to vector<8x16xf32>
    %309 = arith.maximumf %307, %308 : vector<8x16xf32>
    %c4_311 = arith.constant 4 : index
    %c3_312 = arith.constant 3 : index
    %c0_313 = arith.constant 0 : index
    %c0_314 = arith.constant 0 : index
    %310 = vector.load %arg1[%c4_311, %c3_312, %c0_313, %c0_314] : memref<6x6x8x12xbf16, #tpu.memory_space<vmem>>, vector<1x1x8x12xbf16>
    %311 = vector.shape_cast %310 : vector<1x1x8x12xbf16> to vector<8x12xbf16>
    %c0_315 = arith.constant 0 : index
    %c0_316 = arith.constant 0 : index
    %312 = vector.load %arg2[%c0_315, %c0_316] : memref<12x16xbf16, #tpu.memory_space<vmem>>, vector<12x16xbf16>
    %cst_317 = arith.constant dense<0.000000e+00> : vector<8x16xf32>
    %313 = tpu.matmul %311, %312, %cst_317 {dimension_numbers = #tpu.dot_dimension_numbers<[1], [0], [0], [1], [0, 0, 1, 1], [], []>} : vector<8x12xbf16>, vector<12x16xbf16>, vector<8x16xf32> -> vector<8x16xf32>
    %c0_318 = arith.constant 0 : index
    %c0_319 = arith.constant 0 : index
    %314 = vector.load %arg3[%c0_318, %c0_319] : memref<1x16xf32, #tpu.memory_space<vmem>>, vector<1x16xf32>
    %315 = vector.broadcast %314 : vector<1x16xf32> to vector<8x16xf32>
    %316 = arith.addf %313, %315 : vector<8x16xf32>
    %cst_320 = arith.constant 0.000000e+00 : f32
    %317 = vector.broadcast %cst_320 : f32 to vector<8x16xf32>
    %318 = arith.maximumf %316, %317 : vector<8x16xf32>
    %c5_321 = arith.constant 5 : index
    %c2_322 = arith.constant 2 : index
    %c0_323 = arith.constant 0 : index
    %c0_324 = arith.constant 0 : index
    %319 = vector.load %arg1[%c5_321, %c2_322, %c0_323, %c0_324] : memref<6x6x8x12xbf16, #tpu.memory_space<vmem>>, vector<1x1x8x12xbf16>
    %320 = vector.shape_cast %319 : vector<1x1x8x12xbf16> to vector<8x12xbf16>
    %c0_325 = arith.constant 0 : index
    %c0_326 = arith.constant 0 : index
    %321 = vector.load %arg2[%c0_325, %c0_326] : memref<12x16xbf16, #tpu.memory_space<vmem>>, vector<12x16xbf16>
    %cst_327 = arith.constant dense<0.000000e+00> : vector<8x16xf32>
    %322 = tpu.matmul %320, %321, %cst_327 {dimension_numbers = #tpu.dot_dimension_numbers<[1], [0], [0], [1], [0, 0, 1, 1], [], []>} : vector<8x12xbf16>, vector<12x16xbf16>, vector<8x16xf32> -> vector<8x16xf32>
    %c0_328 = arith.constant 0 : index
    %c0_329 = arith.constant 0 : index
    %323 = vector.load %arg3[%c0_328, %c0_329] : memref<1x16xf32, #tpu.memory_space<vmem>>, vector<1x16xf32>
    %324 = vector.broadcast %323 : vector<1x16xf32> to vector<8x16xf32>
    %325 = arith.addf %322, %324 : vector<8x16xf32>
    %cst_330 = arith.constant 0.000000e+00 : f32
    %326 = vector.broadcast %cst_330 : f32 to vector<8x16xf32>
    %327 = arith.maximumf %325, %326 : vector<8x16xf32>
    %c5_331 = arith.constant 5 : index
    %c3_332 = arith.constant 3 : index
    %c0_333 = arith.constant 0 : index
    %c0_334 = arith.constant 0 : index
    %328 = vector.load %arg1[%c5_331, %c3_332, %c0_333, %c0_334] : memref<6x6x8x12xbf16, #tpu.memory_space<vmem>>, vector<1x1x8x12xbf16>
    %329 = vector.shape_cast %328 : vector<1x1x8x12xbf16> to vector<8x12xbf16>
    %c0_335 = arith.constant 0 : index
    %c0_336 = arith.constant 0 : index
    %330 = vector.load %arg2[%c0_335, %c0_336] : memref<12x16xbf16, #tpu.memory_space<vmem>>, vector<12x16xbf16>
    %cst_337 = arith.constant dense<0.000000e+00> : vector<8x16xf32>
    %331 = tpu.matmul %329, %330, %cst_337 {dimension_numbers = #tpu.dot_dimension_numbers<[1], [0], [0], [1], [0, 0, 1, 1], [], []>} : vector<8x12xbf16>, vector<12x16xbf16>, vector<8x16xf32> -> vector<8x16xf32>
    %c0_338 = arith.constant 0 : index
    %c0_339 = arith.constant 0 : index
    %332 = vector.load %arg3[%c0_338, %c0_339] : memref<1x16xf32, #tpu.memory_space<vmem>>, vector<1x16xf32>
    %333 = vector.broadcast %332 : vector<1x16xf32> to vector<8x16xf32>
    %334 = arith.addf %331, %333 : vector<8x16xf32>
    %cst_340 = arith.constant 0.000000e+00 : f32
    %335 = vector.broadcast %cst_340 : f32 to vector<8x16xf32>
    %336 = arith.maximumf %334, %335 : vector<8x16xf32>
    %337 = arith.maximumf %309, %318 : vector<8x16xf32>
    %338 = arith.maximumf %327, %336 : vector<8x16xf32>
    %339 = arith.maximumf %337, %338 : vector<8x16xf32>
    %340 = arith.truncf %339 : vector<8x16xf32> to vector<8x16xbf16>
    %c2_341 = arith.constant 2 : index
    %c1_342 = arith.constant 1 : index
    %c0_343 = arith.constant 0 : index
    %c0_344 = arith.constant 0 : index
    %341 = vector.load %arg13[%c2_341, %c1_342, %c0_343, %c0_344] : memref<3x3x8x16xbf16, #tpu.memory_space<vmem>>, vector<1x1x8x16xbf16>
    %342 = vector.shape_cast %341 : vector<1x1x8x16xbf16> to vector<8x16xbf16>
    %343 = vector.shape_cast %340 : vector<8x16xbf16> to vector<1x1x8x16xbf16>
    tpu.vector_store %arg13[%c2_341, %c1_342, %c0_343, %c0_344], %343 {strides = array<i32>} : memref<3x3x8x16xbf16, #tpu.memory_space<vmem>>, vector<1x1x8x16xbf16>,
    %c4_345 = arith.constant 4 : index
    %c4_346 = arith.constant 4 : index
    %c0_347 = arith.constant 0 : index
    %c0_348 = arith.constant 0 : index
    %344 = vector.load %arg1[%c4_345, %c4_346, %c0_347, %c0_348] : memref<6x6x8x12xbf16, #tpu.memory_space<vmem>>, vector<1x1x8x12xbf16>
    %345 = vector.shape_cast %344 : vector<1x1x8x12xbf16> to vector<8x12xbf16>
    %c0_349 = arith.constant 0 : index
    %c0_350 = arith.constant 0 : index
    %346 = vector.load %arg2[%c0_349, %c0_350] : memref<12x16xbf16, #tpu.memory_space<vmem>>, vector<12x16xbf16>
    %cst_351 = arith.constant dense<0.000000e+00> : vector<8x16xf32>
    %347 = tpu.matmul %345, %346, %cst_351 {dimension_numbers = #tpu.dot_dimension_numbers<[1], [0], [0], [1], [0, 0, 1, 1], [], []>} : vector<8x12xbf16>, vector<12x16xbf16>, vector<8x16xf32> -> vector<8x16xf32>
    %c0_352 = arith.constant 0 : index
    %c0_353 = arith.constant 0 : index
    %348 = vector.load %arg3[%c0_352, %c0_353] : memref<1x16xf32, #tpu.memory_space<vmem>>, vector<1x16xf32>
    %349 = vector.broadcast %348 : vector<1x16xf32> to vector<8x16xf32>
    %350 = arith.addf %347, %349 : vector<8x16xf32>
    %cst_354 = arith.constant 0.000000e+00 : f32
    %351 = vector.broadcast %cst_354 : f32 to vector<8x16xf32>
    %352 = arith.maximumf %350, %351 : vector<8x16xf32>
    %c4_355 = arith.constant 4 : index
    %c5_356 = arith.constant 5 : index
    %c0_357 = arith.constant 0 : index
    %c0_358 = arith.constant 0 : index
    %353 = vector.load %arg1[%c4_355, %c5_356, %c0_357, %c0_358] : memref<6x6x8x12xbf16, #tpu.memory_space<vmem>>, vector<1x1x8x12xbf16>
    %354 = vector.shape_cast %353 : vector<1x1x8x12xbf16> to vector<8x12xbf16>
    %c0_359 = arith.constant 0 : index
    %c0_360 = arith.constant 0 : index
    %355 = vector.load %arg2[%c0_359, %c0_360] : memref<12x16xbf16, #tpu.memory_space<vmem>>, vector<12x16xbf16>
    %cst_361 = arith.constant dense<0.000000e+00> : vector<8x16xf32>
    %356 = tpu.matmul %354, %355, %cst_361 {dimension_numbers = #tpu.dot_dimension_numbers<[1], [0], [0], [1], [0, 0, 1, 1], [], []>} : vector<8x12xbf16>, vector<12x16xbf16>, vector<8x16xf32> -> vector<8x16xf32>
    %c0_362 = arith.constant 0 : index
    %c0_363 = arith.constant 0 : index
    %357 = vector.load %arg3[%c0_362, %c0_363] : memref<1x16xf32, #tpu.memory_space<vmem>>, vector<1x16xf32>
    %358 = vector.broadcast %357 : vector<1x16xf32> to vector<8x16xf32>
    %359 = arith.addf %356, %358 : vector<8x16xf32>
    %cst_364 = arith.constant 0.000000e+00 : f32
    %360 = vector.broadcast %cst_364 : f32 to vector<8x16xf32>
    %361 = arith.maximumf %359, %360 : vector<8x16xf32>
    %c5_365 = arith.constant 5 : index
    %c4_366 = arith.constant 4 : index
    %c0_367 = arith.constant 0 : index
    %c0_368 = arith.constant 0 : index
    %362 = vector.load %arg1[%c5_365, %c4_366, %c0_367, %c0_368] : memref<6x6x8x12xbf16, #tpu.memory_space<vmem>>, vector<1x1x8x12xbf16>
    %363 = vector.shape_cast %362 : vector<1x1x8x12xbf16> to vector<8x12xbf16>
    %c0_369 = arith.constant 0 : index
    %c0_370 = arith.constant 0 : index
    %364 = vector.load %arg2[%c0_369, %c0_370] : memref<12x16xbf16, #tpu.memory_space<vmem>>, vector<12x16xbf16>
    %cst_371 = arith.constant dense<0.000000e+00> : vector<8x16xf32>
    %365 = tpu.matmul %363, %364, %cst_371 {dimension_numbers = #tpu.dot_dimension_numbers<[1], [0], [0], [1], [0, 0, 1, 1], [], []>} : vector<8x12xbf16>, vector<12x16xbf16>, vector<8x16xf32> -> vector<8x16xf32>
    %c0_372 = arith.constant 0 : index
    %c0_373 = arith.constant 0 : index
    %366 = vector.load %arg3[%c0_372, %c0_373] : memref<1x16xf32, #tpu.memory_space<vmem>>, vector<1x16xf32>
    %367 = vector.broadcast %366 : vector<1x16xf32> to vector<8x16xf32>
    %368 = arith.addf %365, %367 : vector<8x16xf32>
    %cst_374 = arith.constant 0.000000e+00 : f32
    %369 = vector.broadcast %cst_374 : f32 to vector<8x16xf32>
    %370 = arith.maximumf %368, %369 : vector<8x16xf32>
    %c5_375 = arith.constant 5 : index
    %c5_376 = arith.constant 5 : index
    %c0_377 = arith.constant 0 : index
    %c0_378 = arith.constant 0 : index
    %371 = vector.load %arg1[%c5_375, %c5_376, %c0_377, %c0_378] : memref<6x6x8x12xbf16, #tpu.memory_space<vmem>>, vector<1x1x8x12xbf16>
    %372 = vector.shape_cast %371 : vector<1x1x8x12xbf16> to vector<8x12xbf16>
    %c0_379 = arith.constant 0 : index
    %c0_380 = arith.constant 0 : index
    %373 = vector.load %arg2[%c0_379, %c0_380] : memref<12x16xbf16, #tpu.memory_space<vmem>>, vector<12x16xbf16>
    %cst_381 = arith.constant dense<0.000000e+00> : vector<8x16xf32>
    %374 = tpu.matmul %372, %373, %cst_381 {dimension_numbers = #tpu.dot_dimension_numbers<[1], [0], [0], [1], [0, 0, 1, 1], [], []>} : vector<8x12xbf16>, vector<12x16xbf16>, vector<8x16xf32> -> vector<8x16xf32>
    %c0_382 = arith.constant 0 : index
    %c0_383 = arith.constant 0 : index
    %375 = vector.load %arg3[%c0_382, %c0_383] : memref<1x16xf32, #tpu.memory_space<vmem>>, vector<1x16xf32>
    %376 = vector.broadcast %375 : vector<1x16xf32> to vector<8x16xf32>
    %377 = arith.addf %374, %376 : vector<8x16xf32>
    %cst_384 = arith.constant 0.000000e+00 : f32
    %378 = vector.broadcast %cst_384 : f32 to vector<8x16xf32>
    %379 = arith.maximumf %377, %378 : vector<8x16xf32>
    %380 = arith.maximumf %352, %361 : vector<8x16xf32>
    %381 = arith.maximumf %370, %379 : vector<8x16xf32>
    %382 = arith.maximumf %380, %381 : vector<8x16xf32>
    %383 = arith.truncf %382 : vector<8x16xf32> to vector<8x16xbf16>
    %c2_385 = arith.constant 2 : index
    %c2_386 = arith.constant 2 : index
    %c0_387 = arith.constant 0 : index
    %c0_388 = arith.constant 0 : index
    %384 = vector.load %arg13[%c2_385, %c2_386, %c0_387, %c0_388] : memref<3x3x8x16xbf16, #tpu.memory_space<vmem>>, vector<1x1x8x16xbf16>
    %385 = vector.shape_cast %384 : vector<1x1x8x16xbf16> to vector<8x16xbf16>
    %386 = vector.shape_cast %383 : vector<8x16xbf16> to vector<1x1x8x16xbf16>
    tpu.vector_store %arg13[%c2_385, %c2_386, %c0_387, %c0_388], %386 {strides = array<i32>} : memref<3x3x8x16xbf16, #tpu.memory_space<vmem>>, vector<1x1x8x16xbf16>,
    %c0_389 = arith.constant 0 : index
    %c0_390 = arith.constant 0 : index
    %c0_391 = arith.constant 0 : index
    %c0_392 = arith.constant 0 : index
    %387 = vector.load %arg13[%c0_389, %c0_390, %c0_391, %c0_392] : memref<3x3x8x16xbf16, #tpu.memory_space<vmem>>, vector<1x1x8x16xbf16>
    %388 = vector.shape_cast %387 : vector<1x1x8x16xbf16> to vector<8x16xbf16>
    %c0_393 = arith.constant 0 : index
    %c1_394 = arith.constant 1 : index
    %c0_395 = arith.constant 0 : index
    %c0_396 = arith.constant 0 : index
    %389 = vector.load %arg13[%c0_393, %c1_394, %c0_395, %c0_396] : memref<3x3x8x16xbf16, #tpu.memory_space<vmem>>, vector<1x1x8x16xbf16>
    %390 = vector.shape_cast %389 : vector<1x1x8x16xbf16> to vector<8x16xbf16>
    %c1_397 = arith.constant 1 : index
    %c0_398 = arith.constant 0 : index
    %c0_399 = arith.constant 0 : index
    %c0_400 = arith.constant 0 : index
    %391 = vector.load %arg13[%c1_397, %c0_398, %c0_399, %c0_400] : memref<3x3x8x16xbf16, #tpu.memory_space<vmem>>, vector<1x1x8x16xbf16>
    %392 = vector.shape_cast %391 : vector<1x1x8x16xbf16> to vector<8x16xbf16>
    %c1_401 = arith.constant 1 : index
    %c1_402 = arith.constant 1 : index
    %c0_403 = arith.constant 0 : index
    %c0_404 = arith.constant 0 : index
    %393 = vector.load %arg13[%c1_401, %c1_402, %c0_403, %c0_404] : memref<3x3x8x16xbf16, #tpu.memory_space<vmem>>, vector<1x1x8x16xbf16>
    %394 = vector.shape_cast %393 : vector<1x1x8x16xbf16> to vector<8x16xbf16>
    %395 = tpu.concatenate %388, %390, %392, %394 in 1 : vector<8x16xbf16>, vector<8x16xbf16>, vector<8x16xbf16>, vector<8x16xbf16> -> vector<8x64xbf16>
    %c0_405 = arith.constant 0 : index
    %c0_406 = arith.constant 0 : index
    %396 = vector.load %arg4[%c0_405, %c0_406] : memref<64x32xbf16, #tpu.memory_space<vmem>>, vector<64x32xbf16>
    %cst_407 = arith.constant dense<0.000000e+00> : vector<8x32xf32>
    %397 = tpu.matmul %395, %396, %cst_407 {dimension_numbers = #tpu.dot_dimension_numbers<[1], [0], [0], [1], [0, 0, 1, 1], [], []>} : vector<8x64xbf16>, vector<64x32xbf16>, vector<8x32xf32> -> vector<8x32xf32>
    %c0_408 = arith.constant 0 : index
    %c0_409 = arith.constant 0 : index
    %398 = vector.load %arg5[%c0_408, %c0_409] : memref<1x32xf32, #tpu.memory_space<vmem>>, vector<1x32xf32>
    %399 = vector.broadcast %398 : vector<1x32xf32> to vector<8x32xf32>
    %400 = arith.addf %397, %399 : vector<8x32xf32>
    %cst_410 = arith.constant 0.000000e+00 : f32
    %401 = vector.broadcast %cst_410 : f32 to vector<8x32xf32>
    %402 = arith.maximumf %400, %401 : vector<8x32xf32>
    %403 = arith.truncf %402 : vector<8x32xf32> to vector<8x32xbf16>
    %c0_411 = arith.constant 0 : index
    %c0_412 = arith.constant 0 : index
    %c0_413 = arith.constant 0 : index
    %c0_414 = arith.constant 0 : index
    %404 = vector.load %arg14[%c0_411, %c0_412, %c0_413, %c0_414] : memref<2x2x8x32xbf16, #tpu.memory_space<vmem>>, vector<1x1x8x32xbf16>
    %405 = vector.shape_cast %404 : vector<1x1x8x32xbf16> to vector<8x32xbf16>
    %406 = vector.shape_cast %403 : vector<8x32xbf16> to vector<1x1x8x32xbf16>
    tpu.vector_store %arg14[%c0_411, %c0_412, %c0_413, %c0_414], %406 {strides = array<i32>} : memref<2x2x8x32xbf16, #tpu.memory_space<vmem>>, vector<1x1x8x32xbf16>,
    %c0_415 = arith.constant 0 : index
    %c1_416 = arith.constant 1 : index
    %c0_417 = arith.constant 0 : index
    %c0_418 = arith.constant 0 : index
    %407 = vector.load %arg13[%c0_415, %c1_416, %c0_417, %c0_418] : memref<3x3x8x16xbf16, #tpu.memory_space<vmem>>, vector<1x1x8x16xbf16>
    %408 = vector.shape_cast %407 : vector<1x1x8x16xbf16> to vector<8x16xbf16>
    %c0_419 = arith.constant 0 : index
    %c2_420 = arith.constant 2 : index
    %c0_421 = arith.constant 0 : index
    %c0_422 = arith.constant 0 : index
    %409 = vector.load %arg13[%c0_419, %c2_420, %c0_421, %c0_422] : memref<3x3x8x16xbf16, #tpu.memory_space<vmem>>, vector<1x1x8x16xbf16>
    %410 = vector.shape_cast %409 : vector<1x1x8x16xbf16> to vector<8x16xbf16>
    %c1_423 = arith.constant 1 : index
    %c1_424 = arith.constant 1 : index
    %c0_425 = arith.constant 0 : index
    %c0_426 = arith.constant 0 : index
    %411 = vector.load %arg13[%c1_423, %c1_424, %c0_425, %c0_426] : memref<3x3x8x16xbf16, #tpu.memory_space<vmem>>, vector<1x1x8x16xbf16>
    %412 = vector.shape_cast %411 : vector<1x1x8x16xbf16> to vector<8x16xbf16>
    %c1_427 = arith.constant 1 : index
    %c2_428 = arith.constant 2 : index
    %c0_429 = arith.constant 0 : index
    %c0_430 = arith.constant 0 : index
    %413 = vector.load %arg13[%c1_427, %c2_428, %c0_429, %c0_430] : memref<3x3x8x16xbf16, #tpu.memory_space<vmem>>, vector<1x1x8x16xbf16>
    %414 = vector.shape_cast %413 : vector<1x1x8x16xbf16> to vector<8x16xbf16>
    %415 = tpu.concatenate %408, %410, %412, %414 in 1 : vector<8x16xbf16>, vector<8x16xbf16>, vector<8x16xbf16>, vector<8x16xbf16> -> vector<8x64xbf16>
    %c0_431 = arith.constant 0 : index
    %c0_432 = arith.constant 0 : index
    %416 = vector.load %arg4[%c0_431, %c0_432] : memref<64x32xbf16, #tpu.memory_space<vmem>>, vector<64x32xbf16>
    %cst_433 = arith.constant dense<0.000000e+00> : vector<8x32xf32>
    %417 = tpu.matmul %415, %416, %cst_433 {dimension_numbers = #tpu.dot_dimension_numbers<[1], [0], [0], [1], [0, 0, 1, 1], [], []>} : vector<8x64xbf16>, vector<64x32xbf16>, vector<8x32xf32> -> vector<8x32xf32>
    %c0_434 = arith.constant 0 : index
    %c0_435 = arith.constant 0 : index
    %418 = vector.load %arg5[%c0_434, %c0_435] : memref<1x32xf32, #tpu.memory_space<vmem>>, vector<1x32xf32>
    %419 = vector.broadcast %418 : vector<1x32xf32> to vector<8x32xf32>
    %420 = arith.addf %417, %419 : vector<8x32xf32>
    %cst_436 = arith.constant 0.000000e+00 : f32
    %421 = vector.broadcast %cst_436 : f32 to vector<8x32xf32>
    %422 = arith.maximumf %420, %421 : vector<8x32xf32>
    %423 = arith.truncf %422 : vector<8x32xf32> to vector<8x32xbf16>
    %c0_437 = arith.constant 0 : index
    %c1_438 = arith.constant 1 : index
    %c0_439 = arith.constant 0 : index
    %c0_440 = arith.constant 0 : index
    %424 = vector.load %arg14[%c0_437, %c1_438, %c0_439, %c0_440] : memref<2x2x8x32xbf16, #tpu.memory_space<vmem>>, vector<1x1x8x32xbf16>
    %425 = vector.shape_cast %424 : vector<1x1x8x32xbf16> to vector<8x32xbf16>
    %426 = vector.shape_cast %423 : vector<8x32xbf16> to vector<1x1x8x32xbf16>
    tpu.vector_store %arg14[%c0_437, %c1_438, %c0_439, %c0_440], %426 {strides = array<i32>} : memref<2x2x8x32xbf16, #tpu.memory_space<vmem>>, vector<1x1x8x32xbf16>,
    %c1_441 = arith.constant 1 : index
    %c0_442 = arith.constant 0 : index
    %c0_443 = arith.constant 0 : index
    %c0_444 = arith.constant 0 : index
    %427 = vector.load %arg13[%c1_441, %c0_442, %c0_443, %c0_444] : memref<3x3x8x16xbf16, #tpu.memory_space<vmem>>, vector<1x1x8x16xbf16>
    %428 = vector.shape_cast %427 : vector<1x1x8x16xbf16> to vector<8x16xbf16>
    %c1_445 = arith.constant 1 : index
    %c1_446 = arith.constant 1 : index
    %c0_447 = arith.constant 0 : index
    %c0_448 = arith.constant 0 : index
    %429 = vector.load %arg13[%c1_445, %c1_446, %c0_447, %c0_448] : memref<3x3x8x16xbf16, #tpu.memory_space<vmem>>, vector<1x1x8x16xbf16>
    %430 = vector.shape_cast %429 : vector<1x1x8x16xbf16> to vector<8x16xbf16>
    %c2_449 = arith.constant 2 : index
    %c0_450 = arith.constant 0 : index
    %c0_451 = arith.constant 0 : index
    %c0_452 = arith.constant 0 : index
    %431 = vector.load %arg13[%c2_449, %c0_450, %c0_451, %c0_452] : memref<3x3x8x16xbf16, #tpu.memory_space<vmem>>, vector<1x1x8x16xbf16>
    %432 = vector.shape_cast %431 : vector<1x1x8x16xbf16> to vector<8x16xbf16>
    %c2_453 = arith.constant 2 : index
    %c1_454 = arith.constant 1 : index
    %c0_455 = arith.constant 0 : index
    %c0_456 = arith.constant 0 : index
    %433 = vector.load %arg13[%c2_453, %c1_454, %c0_455, %c0_456] : memref<3x3x8x16xbf16, #tpu.memory_space<vmem>>, vector<1x1x8x16xbf16>
    %434 = vector.shape_cast %433 : vector<1x1x8x16xbf16> to vector<8x16xbf16>
    %435 = tpu.concatenate %428, %430, %432, %434 in 1 : vector<8x16xbf16>, vector<8x16xbf16>, vector<8x16xbf16>, vector<8x16xbf16> -> vector<8x64xbf16>
    %c0_457 = arith.constant 0 : index
    %c0_458 = arith.constant 0 : index
    %436 = vector.load %arg4[%c0_457, %c0_458] : memref<64x32xbf16, #tpu.memory_space<vmem>>, vector<64x32xbf16>
    %cst_459 = arith.constant dense<0.000000e+00> : vector<8x32xf32>
    %437 = tpu.matmul %435, %436, %cst_459 {dimension_numbers = #tpu.dot_dimension_numbers<[1], [0], [0], [1], [0, 0, 1, 1], [], []>} : vector<8x64xbf16>, vector<64x32xbf16>, vector<8x32xf32> -> vector<8x32xf32>
    %c0_460 = arith.constant 0 : index
    %c0_461 = arith.constant 0 : index
    %438 = vector.load %arg5[%c0_460, %c0_461] : memref<1x32xf32, #tpu.memory_space<vmem>>, vector<1x32xf32>
    %439 = vector.broadcast %438 : vector<1x32xf32> to vector<8x32xf32>
    %440 = arith.addf %437, %439 : vector<8x32xf32>
    %cst_462 = arith.constant 0.000000e+00 : f32
    %441 = vector.broadcast %cst_462 : f32 to vector<8x32xf32>
    %442 = arith.maximumf %440, %441 : vector<8x32xf32>
    %443 = arith.truncf %442 : vector<8x32xf32> to vector<8x32xbf16>
    %c1_463 = arith.constant 1 : index
    %c0_464 = arith.constant 0 : index
    %c0_465 = arith.constant 0 : index
    %c0_466 = arith.constant 0 : index
    %444 = vector.load %arg14[%c1_463, %c0_464, %c0_465, %c0_466] : memref<2x2x8x32xbf16, #tpu.memory_space<vmem>>, vector<1x1x8x32xbf16>
    %445 = vector.shape_cast %444 : vector<1x1x8x32xbf16> to vector<8x32xbf16>
    %446 = vector.shape_cast %443 : vector<8x32xbf16> to vector<1x1x8x32xbf16>
    tpu.vector_store %arg14[%c1_463, %c0_464, %c0_465, %c0_466], %446 {strides = array<i32>} : memref<2x2x8x32xbf16, #tpu.memory_space<vmem>>, vector<1x1x8x32xbf16>,
    %c1_467 = arith.constant 1 : index
    %c1_468 = arith.constant 1 : index
    %c0_469 = arith.constant 0 : index
    %c0_470 = arith.constant 0 : index
    %447 = vector.load %arg13[%c1_467, %c1_468, %c0_469, %c0_470] : memref<3x3x8x16xbf16, #tpu.memory_space<vmem>>, vector<1x1x8x16xbf16>
    %448 = vector.shape_cast %447 : vector<1x1x8x16xbf16> to vector<8x16xbf16>
    %c1_471 = arith.constant 1 : index
    %c2_472 = arith.constant 2 : index
    %c0_473 = arith.constant 0 : index
    %c0_474 = arith.constant 0 : index
    %449 = vector.load %arg13[%c1_471, %c2_472, %c0_473, %c0_474] : memref<3x3x8x16xbf16, #tpu.memory_space<vmem>>, vector<1x1x8x16xbf16>
    %450 = vector.shape_cast %449 : vector<1x1x8x16xbf16> to vector<8x16xbf16>
    %c2_475 = arith.constant 2 : index
    %c1_476 = arith.constant 1 : index
    %c0_477 = arith.constant 0 : index
    %c0_478 = arith.constant 0 : index
    %451 = vector.load %arg13[%c2_475, %c1_476, %c0_477, %c0_478] : memref<3x3x8x16xbf16, #tpu.memory_space<vmem>>, vector<1x1x8x16xbf16>
    %452 = vector.shape_cast %451 : vector<1x1x8x16xbf16> to vector<8x16xbf16>
    %c2_479 = arith.constant 2 : index
    %c2_480 = arith.constant 2 : index
    %c0_481 = arith.constant 0 : index
    %c0_482 = arith.constant 0 : index
    %453 = vector.load %arg13[%c2_479, %c2_480, %c0_481, %c0_482] : memref<3x3x8x16xbf16, #tpu.memory_space<vmem>>, vector<1x1x8x16xbf16>
    %454 = vector.shape_cast %453 : vector<1x1x8x16xbf16> to vector<8x16xbf16>
    %455 = tpu.concatenate %448, %450, %452, %454 in 1 : vector<8x16xbf16>, vector<8x16xbf16>, vector<8x16xbf16>, vector<8x16xbf16> -> vector<8x64xbf16>
    %c0_483 = arith.constant 0 : index
    %c0_484 = arith.constant 0 : index
    %456 = vector.load %arg4[%c0_483, %c0_484] : memref<64x32xbf16, #tpu.memory_space<vmem>>, vector<64x32xbf16>
    %cst_485 = arith.constant dense<0.000000e+00> : vector<8x32xf32>
    %457 = tpu.matmul %455, %456, %cst_485 {dimension_numbers = #tpu.dot_dimension_numbers<[1], [0], [0], [1], [0, 0, 1, 1], [], []>} : vector<8x64xbf16>, vector<64x32xbf16>, vector<8x32xf32> -> vector<8x32xf32>
    %c0_486 = arith.constant 0 : index
    %c0_487 = arith.constant 0 : index
    %458 = vector.load %arg5[%c0_486, %c0_487] : memref<1x32xf32, #tpu.memory_space<vmem>>, vector<1x32xf32>
    %459 = vector.broadcast %458 : vector<1x32xf32> to vector<8x32xf32>
    %460 = arith.addf %457, %459 : vector<8x32xf32>
    %cst_488 = arith.constant 0.000000e+00 : f32
    %461 = vector.broadcast %cst_488 : f32 to vector<8x32xf32>
    %462 = arith.maximumf %460, %461 : vector<8x32xf32>
    %463 = arith.truncf %462 : vector<8x32xf32> to vector<8x32xbf16>
    %c1_489 = arith.constant 1 : index
    %c1_490 = arith.constant 1 : index
    %c0_491 = arith.constant 0 : index
    %c0_492 = arith.constant 0 : index
    %464 = vector.load %arg14[%c1_489, %c1_490, %c0_491, %c0_492] : memref<2x2x8x32xbf16, #tpu.memory_space<vmem>>, vector<1x1x8x32xbf16>
    %465 = vector.shape_cast %464 : vector<1x1x8x32xbf16> to vector<8x32xbf16>
    %466 = vector.shape_cast %463 : vector<8x32xbf16> to vector<1x1x8x32xbf16>
    tpu.vector_store %arg14[%c1_489, %c1_490, %c0_491, %c0_492], %466 {strides = array<i32>} : memref<2x2x8x32xbf16, #tpu.memory_space<vmem>>, vector<1x1x8x32xbf16>,
    %c0_493 = arith.constant 0 : index
    %c0_494 = arith.constant 0 : index
    %c0_495 = arith.constant 0 : index
    %c0_496 = arith.constant 0 : index
    %467 = vector.load %arg14[%c0_493, %c0_494, %c0_495, %c0_496] : memref<2x2x8x32xbf16, #tpu.memory_space<vmem>>, vector<1x1x8x32xbf16>
    %468 = vector.shape_cast %467 : vector<1x1x8x32xbf16> to vector<8x32xbf16>
    %c0_497 = arith.constant 0 : index
    %c1_498 = arith.constant 1 : index
    %c0_499 = arith.constant 0 : index
    %c0_500 = arith.constant 0 : index
    %469 = vector.load %arg14[%c0_497, %c1_498, %c0_499, %c0_500] : memref<2x2x8x32xbf16, #tpu.memory_space<vmem>>, vector<1x1x8x32xbf16>
    %470 = vector.shape_cast %469 : vector<1x1x8x32xbf16> to vector<8x32xbf16>
    %c1_501 = arith.constant 1 : index
    %c0_502 = arith.constant 0 : index
    %c0_503 = arith.constant 0 : index
    %c0_504 = arith.constant 0 : index
    %471 = vector.load %arg14[%c1_501, %c0_502, %c0_503, %c0_504] : memref<2x2x8x32xbf16, #tpu.memory_space<vmem>>, vector<1x1x8x32xbf16>
    %472 = vector.shape_cast %471 : vector<1x1x8x32xbf16> to vector<8x32xbf16>
    %c1_505 = arith.constant 1 : index
    %c1_506 = arith.constant 1 : index
    %c0_507 = arith.constant 0 : index
    %c0_508 = arith.constant 0 : index
    %473 = vector.load %arg14[%c1_505, %c1_506, %c0_507, %c0_508] : memref<2x2x8x32xbf16, #tpu.memory_space<vmem>>, vector<1x1x8x32xbf16>
    %474 = vector.shape_cast %473 : vector<1x1x8x32xbf16> to vector<8x32xbf16>
    %475 = tpu.concatenate %468, %470, %472, %474 in 1 : vector<8x32xbf16>, vector<8x32xbf16>, vector<8x32xbf16>, vector<8x32xbf16> -> vector<8x128xbf16>
    %c0_509 = arith.constant 0 : index
    %c0_510 = arith.constant 0 : index
    %476 = vector.load %arg6[%c0_509, %c0_510] : memref<128x64xbf16, #tpu.memory_space<vmem>>, vector<128x64xbf16>
    %cst_511 = arith.constant dense<0.000000e+00> : vector<8x64xf32>
    %477 = tpu.matmul %475, %476, %cst_511 {dimension_numbers = #tpu.dot_dimension_numbers<[1], [0], [0], [1], [0, 0, 1, 1], [], []>} : vector<8x128xbf16>, vector<128x64xbf16>, vector<8x64xf32> -> vector<8x64xf32>
    %c0_512 = arith.constant 0 : index
    %c0_513 = arith.constant 0 : index
    %478 = vector.load %arg7[%c0_512, %c0_513] : memref<1x64xf32, #tpu.memory_space<vmem>>, vector<1x64xf32>
    %479 = vector.broadcast %478 : vector<1x64xf32> to vector<8x64xf32>
    %480 = arith.addf %477, %479 : vector<8x64xf32>
    %cst_514 = arith.constant 0.000000e+00 : f32
    %481 = vector.broadcast %cst_514 : f32 to vector<8x64xf32>
    %482 = arith.maximumf %480, %481 : vector<8x64xf32>
    %483 = arith.truncf %482 : vector<8x64xf32> to vector<8x64xbf16>
    %c0_515 = arith.constant 0 : index
    %c0_516 = arith.constant 0 : index
    %484 = vector.load %arg8[%c0_515, %c0_516] : memref<64x128xbf16, #tpu.memory_space<vmem>>, vector<64x128xbf16>
    %cst_517 = arith.constant dense<0.000000e+00> : vector<8x128xf32>
    %485 = tpu.matmul %483, %484, %cst_517 {dimension_numbers = #tpu.dot_dimension_numbers<[1], [0], [0], [1], [0, 0, 1, 1], [], []>} : vector<8x64xbf16>, vector<64x128xbf16>, vector<8x128xf32> -> vector<8x128xf32>
    %c0_518 = arith.constant 0 : index
    %c0_519 = arith.constant 0 : index
    %486 = vector.load %arg9[%c0_518, %c0_519] : memref<1x128xf32, #tpu.memory_space<vmem>>, vector<1x128xf32>
    %487 = vector.broadcast %486 : vector<1x128xf32> to vector<8x128xf32>
    %488 = arith.addf %485, %487 : vector<8x128xf32>
    %489 = math.tanh %488 : vector<8x128xf32>
    %490 = arith.truncf %489 : vector<8x128xf32> to vector<8x128xbf16>
    %c0_520 = arith.constant 0 : index
    %c0_521 = arith.constant 0 : index
    %491 = vector.load %arg10[%c0_520, %c0_521] : memref<128x128xbf16, #tpu.memory_space<vmem>>, vector<128x128xbf16>
    %cst_522 = arith.constant dense<0.000000e+00> : vector<8x128xf32>
    %492 = tpu.matmul %490, %491, %cst_522 {dimension_numbers = #tpu.dot_dimension_numbers<[1], [0], [0], [1], [0, 0, 1, 1], [], []>} : vector<8x128xbf16>, vector<128x128xbf16>, vector<8x128xf32> -> vector<8x128xf32>
    %c0_523 = arith.constant 0 : index
    %c0_524 = arith.constant 0 : index
    %493 = vector.load %arg11[%c0_523, %c0_524] : memref<1x128xf32, #tpu.memory_space<vmem>>, vector<1x128xf32>
    %494 = vector.broadcast %493 : vector<1x128xf32> to vector<8x128xf32>
    %495 = arith.addf %492, %494 : vector<8x128xf32>
    %496 = tpu.iota {dimensions = array<i32: 1>} : vector<8x128xi32>
    %c7_i32 = arith.constant 7 : i32
    %497 = vector.broadcast %c7_i32 : i32 to vector<8x128xi32>
    %498 = arith.cmpi slt, %496, %497 : vector<8x128xi32>
    %cst_525 = arith.constant -1.000000e+30 : f32
    %499 = vector.broadcast %cst_525 : f32 to vector<8x128xf32>
    %500 = arith.select %498, %495, %499 : vector<8x128xi1>, vector<8x128xf32>
    %cst_526 = arith.constant dense<0xFF800000> : vector<8xf32>
    %501 = vector.multi_reduction <maximumf>, %500, %cst_526 [1] : vector<8x128xf32> to vector<8xf32>
    %502 = vector.shape_cast %501 : vector<8xf32> to vector<8x1xf32>
    %503 = vector.broadcast %502 : vector<8x1xf32> to vector<8x128xf32>
    %504 = arith.subf %500, %503 : vector<8x128xf32>
    %505 = math.exp %504 : vector<8x128xf32>
    %cst_527 = arith.constant dense<0.000000e+00> : vector<8xf32>
    %506 = vector.multi_reduction <add>, %505, %cst_527 [1] : vector<8x128xf32> to vector<8xf32>
    %507 = vector.shape_cast %506 : vector<8xf32> to vector<8x1xf32>
    %508 = math.log %507 : vector<8x1xf32>
    %509 = vector.broadcast %508 : vector<8x1xf32> to vector<8x128xf32>
    %510 = arith.subf %504, %509 : vector<8x128xf32>
    %c7_i32_528 = arith.constant 7 : i32
    %511 = vector.broadcast %c7_i32_528 : i32 to vector<8x128xi32>
    %512 = arith.cmpi eq, %496, %511 : vector<8x128xi32>
    %cst_529 = arith.constant 0.000000e+00 : f32
    %513 = vector.broadcast %cst_529 : f32 to vector<8x128xf32>
    %514 = arith.select %512, %495, %513 : vector<8x128xi1>, vector<8x128xf32>
    %515 = arith.select %498, %510, %514 : vector<8x128xi1>, vector<8x128xf32>
    %c0_530 = arith.constant 0 : index
    %c0_531 = arith.constant 0 : index
    %516 = vector.load %arg12[%c0_530, %c0_531] : memref<8x128xf32, #tpu.memory_space<vmem>>, vector<8x128xf32>
    tpu.vector_store %arg12[%c0_530, %c0_531], %515 {strides = array<i32>} : memref<8x128xf32, #tpu.memory_space<vmem>>, vector<8x128xf32>,
    return
  }
  func.func @transform_0(%arg0: i32) -> (i32, i32, i32, i32) {
    %c0_i32 = arith.constant 0 : i32
    %c0_i32_0 = arith.constant 0 : i32
    %c0_i32_1 = arith.constant 0 : i32
    %c0_i32_2 = arith.constant 0 : i32
    return %c0_i32, %c0_i32_0, %arg0, %c0_i32_1 : i32, i32, i32, i32
  }
  func.func @transform_1(%arg0: i32) -> (i32, i32) {
    %c0_i32 = arith.constant 0 : i32
    %c0_i32_0 = arith.constant 0 : i32
    %c0_i32_1 = arith.constant 0 : i32
    return %c0_i32, %c0_i32_0 : i32, i32
  }
  func.func @transform_2(%arg0: i32) -> (i32, i32) {
    %c0_i32 = arith.constant 0 : i32
    %c0_i32_0 = arith.constant 0 : i32
    %c0_i32_1 = arith.constant 0 : i32
    return %c0_i32, %c0_i32_0 : i32, i32
  }
  func.func @transform_3(%arg0: i32) -> (i32, i32) {
    %c0_i32 = arith.constant 0 : i32
    %c0_i32_0 = arith.constant 0 : i32
    %c0_i32_1 = arith.constant 0 : i32
    return %c0_i32, %c0_i32_0 : i32, i32
  }
  func.func @transform_4(%arg0: i32) -> (i32, i32) {
    %c0_i32 = arith.constant 0 : i32
    %c0_i32_0 = arith.constant 0 : i32
    %c0_i32_1 = arith.constant 0 : i32
    return %c0_i32, %c0_i32_0 : i32, i32
  }
  func.func @transform_5(%arg0: i32) -> (i32, i32) {
    %c0_i32 = arith.constant 0 : i32
    %c0_i32_0 = arith.constant 0 : i32
    %c0_i32_1 = arith.constant 0 : i32
    return %c0_i32, %c0_i32_0 : i32, i32
  }
  func.func @transform_6(%arg0: i32) -> (i32, i32) {
    %c0_i32 = arith.constant 0 : i32
    %c0_i32_0 = arith.constant 0 : i32
    %c0_i32_1 = arith.constant 0 : i32
    return %c0_i32, %c0_i32_0 : i32, i32
  }
  func.func @transform_7(%arg0: i32) -> (i32, i32) {
    %c0_i32 = arith.constant 0 : i32
    %c0_i32_0 = arith.constant 0 : i32
    %c0_i32_1 = arith.constant 0 : i32
    return %c0_i32, %c0_i32_0 : i32, i32
  }
  func.func @transform_8(%arg0: i32) -> (i32, i32) {
    %c0_i32 = arith.constant 0 : i32
    %c0_i32_0 = arith.constant 0 : i32
    %c0_i32_1 = arith.constant 0 : i32
    return %c0_i32, %c0_i32_0 : i32, i32
  }
  func.func @transform_9(%arg0: i32) -> (i32, i32) {
    %c0_i32 = arith.constant 0 : i32
    %c0_i32_0 = arith.constant 0 : i32
    %c0_i32_1 = arith.constant 0 : i32
    return %c0_i32, %c0_i32_0 : i32, i32
  }
  func.func @transform_10(%arg0: i32) -> (i32, i32) {
    %c0_i32 = arith.constant 0 : i32
    %c0_i32_0 = arith.constant 0 : i32
    %c0_i32_1 = arith.constant 0 : i32
    return %c0_i32, %c0_i32_0 : i32, i32
  }
  func.func @transform_11(%arg0: i32) -> (i32, i32) {
    %c0_i32 = arith.constant 0 : i32
    %c0_i32_0 = arith.constant 0 : i32
    return %arg0, %c0_i32 : i32, i32
  }
}

</mosaic_0001>

<bundles_post_ra>
// kernel: ac_model_forward.1
= control target key start
LH: loop header
LB: loop body
LE: loop exit
PB: predicated region body
PF: predicated region fallthrough
CT: control target
= control target key end

     0   :  { %vm58_vm0 = vcmask 1045504   ;;  %v3365_v0 = vmov 0.0   ;;  %vm3366_vm1 = vmmov 0   ;;  %vm54_vm2 = vcmask 97280   ;;  %s3368_s18 = smov 32   ;;  %s3369_s26 = smov 48   ;;  %s4005_s1 = inlined_call_operand.vmem [shape: bf16[12,16], index: 1, kind: input, shape index: {}]   ;;  %s4006_s0 = inlined_call_operand.vmem [shape: bf16[6,6,8,12], index: 0, kind: input, shape index: {}]   ;;  %s4007_s2 = inlined_call_operand.vmem [shape: f32[1,16], index: 2, kind: input, shape index: {}]   ;;  %s4008_s3 = inlined_call_operand.vmem [shape: bf16[64,32], index: 3, kind: input, shape index: {}]   ;;  %s4009_s4 = inlined_call_operand.vmem [shape: f32[1,32], index: 4, kind: input, shape index: {}]   ;;  %s4010_s5 = inlined_call_operand.vmem [shape: bf16[128,64], index: 5, kind: input, shape index: {}]   ;;  %s4011_s7 = inlined_call_operand.vmem [shape: bf16[64,128], index: 7, kind: input, shape index: {}]   ;;  %s4012_s9 = inlined_call_operand.vmem [shape: bf16[128,128], index: 9, kind: input, shape index: {}]   ;;  %s4013_s6 = inlined_call_operand.vmem [shape: f32[1,64], index: 6, kind: input, shape index: {}]   ;;  %s4014_s8 = inlined_call_operand.vmem [shape: f32[1,128], index: 8, kind: input, shape index: {}]   ;;  %s4015_s10 = inlined_call_operand.vmem [shape: f32[1,128], index: 10, kind: input, shape index: {}]   ;;  %s4016_s11 = inlined_call_operand.vmem [shape: f32[8,128], index: 11, kind: output, shape index: {}]  }
   0x1   :  { %2976 = vmatprep.subr.bf16.mxu0 %v3365_v0  ;;  %v3299_v1 = vld [vmem:[%s4005_s1] sm:$0x3f]   ;;  %2978 = vmatprep.mubr.msk.bf16.mxu0 %vm3366_vm1, %v3365_v0  ;;  %v2716_v4 = vld [vmem:[%s4006_s0 + $0x1c] sm:$0xf]  ;;  %v2722_v8 = vld [vmem:[%s4006_s0 + $0xc] sm:$0xf] }
   0x2   :  { %2994 = vmatprep.subr.bf16.mxu1 %v3365_v0  ;;  %2996 = vmatprep.mubr.msk.bf16.mxu1 %vm3366_vm1, %v3365_v0  ;;  %v60_v2 = vsel %vm58_vm0, %v3299_v1, 0  ;;  %v39_v3 = vld [vmem:[%s4006_s0] sm:$0xf]  ;;  %v2712_v7 = vld [vmem:[%s4006_s0 + $0x4] sm:$0xf]  ;;  %vm245_vm3 = vcmask 125952  }
   0x3   :  { %2977 = vmatpush3.bf16.msra.mxu0 %v60_v2  ;;  %2995 = vmatpush3.bf16.msra.mxu1 %v60_v2  ;;  %v3300_v5 = vld [vmem:[%s4005_s1] sm:$0x3f]   ;;  %v2714_v13 = vld [vmem:[%s4006_s0 + $0x18] sm:$0xf]  ;;  %v2718_v21 = vld [vmem:[%s4006_s0 + $0x8] sm:$0xf] }
   0x4   :  { %2982 = vmatprep.subr.bf16.mxu0 %v3365_v0  ;;  %3006 = vmatprep.subr.bf16.mxu1 %v3365_v0  ;;  %v267_v6 = vsel %vm58_vm0, %v3300_v5, 0  ;;  %v3304_v9 = vld [vmem:[%s4005_s1] sm:$0x3f]   ;;  %v2732_v22 = vld [vmem:[%s4006_s0 + $0x14] sm:$0xf]  ;;  %vm1922_vm4 = vcmask 130048  }
   0x5   :  { %v3477_v10 = vsel %vm58_vm0, %v3304_v9, 0  ;;  %v3305_v11 = vld [vmem:[%s4005_s1] sm:$0x3f]   ;;  %v2736_v25 = vld [vmem:[%s4006_s0 + $0x2c] sm:$0xf]  ;;  %vm1926_vm5 = vcmask 261120  }
   0x6   :  { %2979 = vmatmul.mubr.msk.bf16.vlgmr.msra.gmra.mrb[0].mxu0 %vm54_vm2, %v39_v3  ;;  %2997 = vmatmul.mubr.msk.bf16.vlgmr.msra.gmra.mrb[0].mxu1 %vm54_vm2, %v2716_v4  ;;  %v3301_v12 = vld [vmem:[%s4005_s1] sm:$0x3f]   ;;  %v3492_v14 = vsel %vm58_vm0, %v3305_v11, 0  ;;  %v2728_v27 = vld [vmem:[%s4006_s0 + $0x10] sm:$0xf]  ;;  %vm1929_vm6 = vcmask 392192  }
   0x7   :  { %2983 = vmatpush3.bf16.msra.mxu0 %v60_v2  ;;  %2984 = vmatprep.mubr.msk.bf16.mxu0 %vm3366_vm1, %v3365_v0  ;;  %v2726_v15 = vld [vmem:[%s4006_s0 + $0x24] sm:$0xf]  ;;  %v474_v17 = vsel %vm58_vm0, %v3301_v12, 0  ;;  %v2724_v24 = vld [vmem:[%s4006_s0 + $0x20] sm:$0xf]  ;;  %vm1971_vm7 = vcmask 523264  }
   0x8   :  { %2988 = vmatprep.subr.bf16.mxu0 %v3365_v0  ;;  %3007 = vmatpush3.bf16.msra.mxu1 %v267_v6  ;;  %v3306_v16 = vld [vmem:[%s4005_s1] sm:$0x3f]   ;;  %v2742_v28 = vld [vmem:[%s4006_s0 + $0x34] sm:$0xf]  ;;  %v2734_v30 = vld [vmem:[%s4006_s0 + $0x28] sm:$0xf] }
   0x9   :  { %3008 = vmatprep.mubr.msk.bf16.mxu1 %vm3366_vm1, %v3365_v0  ;;  %3018 = vmatprep.subr.bf16.mxu1 %v3365_v0  ;;  %v3502_v18 = vsel %vm58_vm0, %v3306_v16, 0  ;;  %v3307_v19 = vld [vmem:[%s4005_s1] sm:$0x3f]   ;;  %v2746_v31 = vld [vmem:[%s4006_s0 + $0x4c] sm:$0xf]  ;;  %vm2016_vm8 = vcmask 257024  }
   0xa   :  { %v3513_v20 = vsel %vm58_vm0, %v3307_v19, 0  ;;  %v3302_v23 = vld [vmem:[%s4005_s1] sm:$0x3f]   ;;  %v2738_v33 = vld [vmem:[%s4006_s0 + $0x30] sm:$0xf]  ;;  %s3370_s16 = smov 64  }
   0xb   :  { %v681_v26 = vsel %vm58_vm0, %v3302_v23, 0  ;;  %v3303_v29 = vld [vmem:[%s4005_s1] sm:$0x3f]   ;;  %v2752_v34 = vld [vmem:[%s4006_s0 + $0x3c] sm:$0xf]  ;;  %s3371_s21 = smov 96  }
   0xc   :  { %v888_v32 = vsel %vm58_vm0, %v3303_v29, 0  ;;  %v2744_v35 = vld [vmem:[%s4006_s0 + $0x48] sm:$0xf]  ;;  %v2756_v36 = vld [vmem:[%s4006_s0 + $0x54] sm:$0xf]  ;;  %vm2375_vm9 = vcmask 785408  }
   0xd   :  { %v2748_v37 = vld [vmem:[%s4006_s0 + $0x38] sm:$0xf]  ;;  %v2762_v38 = vld [vmem:[%s4006_s0 + $0x44] sm:$0xf]  ;;  %v2754_v39 = vld [vmem:[%s4006_s0 + $0x50] sm:$0xf] }
   0xe   :  { %2985 = vmatmul.mubr.msk.bf16.vlgmr.msra.gmra.mrb[4].mxu0 %vm54_vm2, %v2712_v7  ;;  %3009 = vmatmul.mubr.msk.bf16.vlgmr.msra.gmra.mrb[4].mxu1 %vm54_vm2, %v2722_v8  ;;  %v2766_v40 = vld [vmem:[%s4006_s0 + $0x5c] sm:$0xf]  ;;  %v2758_v41 = vld [vmem:[%s4006_s0 + $0x40] sm:$0xf]  ;;  %v2772_v42 = vld [vmem:[%s4006_s0 + $0x64] sm:$0xf] }
   0xf   :  { %2989 = vmatpush3.bf16.msra.mxu0 %v60_v2  ;;  %2990 = vmatprep.mubr.msk.bf16.mxu0 %vm3366_vm1, %v3365_v0  ;;  %v2764_v43 = vld [vmem:[%s4006_s0 + $0x58] sm:$0xf]  ;;  %v2776_v44 = vld [vmem:[%s4006_s0 + $0x7c] sm:$0xf]  ;;  %v2768_v45 = vld [vmem:[%s4006_s0 + $0x60] sm:$0xf] }
  0x10   :  { %3000 = vmatprep.subr.bf16.mxu0 %v3365_v0  ;;  %3019 = vmatpush3.bf16.msra.mxu1 %v267_v6  ;;  %v2782_v46 = vld [vmem:[%s4006_s0 + $0x6c] sm:$0xf]  ;;  %v2774_v47 = vld [vmem:[%s4006_s0 + $0x78] sm:$0xf]  ;;  %v2786_v48 = vld [vmem:[%s4006_s0 + $0x84] sm:$0xf] }
  0x11   :  { %3020 = vmatprep.mubr.msk.bf16.mxu1 %vm3366_vm1, %v3365_v0  ;;  %3030 = vmatprep.subr.bf16.mxu1 %v3365_v0  ;;  %v2778_v49 = vld [vmem:[%s4006_s0 + $0x68] sm:$0xf]  ;;  %v2792_v50 = vld [vmem:[%s4006_s0 + $0x74] sm:$0xf]  ;;  %v2784_v51 = vld [vmem:[%s4006_s0 + $0x80] sm:$0xf] }
  0x12   :  { %v2796_v52 = vld [vmem:[%s4006_s0 + $0x8c] sm:$0xf]  ;;  %v2788_v53 = vld [vmem:[%s4006_s0 + $0x70] sm:$0xf]  ;;  %v2794_v54 = vld [vmem:[%s4006_s0 + $0x88] sm:$0xf] }
  0x13   :  { %v3753_v63 = vld [vmem:[%s4007_s2] ss:$0 sm:$0xff]  ;;  %s3367_s0 = smov 16  }
  0x16   :  { %2991 = vmatmul.mubr.msk.bf16.vlgmr.msra.gmra.mrb[8].mxu0 %vm54_vm2, %v2714_v13  ;;  %3021 = vmatmul.mubr.msk.bf16.vlgmr.msra.gmra.mrb[8].mxu1 %vm54_vm2, %v2726_v15 }
  0x17   :  { %3001 = vmatpush3.bf16.msra.mxu0 %v267_v6  ;;  %3002 = vmatprep.mubr.msk.bf16.mxu0 %vm3366_vm1, %v3365_v0 }
  0x18   :  { %3012 = vmatprep.subr.bf16.mxu0 %v3365_v0  ;;  %3031 = vmatpush3.bf16.msra.mxu1 %v474_v17 }
  0x19   :  { %3032 = vmatprep.mubr.msk.bf16.mxu1 %vm3366_vm1, %v3365_v0  ;;  %3042 = vmatprep.subr.bf16.mxu1 %v3365_v0 }
  0x1e   :  { %3003 = vmatmul.mubr.msk.bf16.vlgmr.msra.gmra.mrb[12].mxu0 %vm54_vm2, %v2718_v21  ;;  %3033 = vmatmul.mubr.msk.bf16.vlgmr.msra.gmra.mrb[12].mxu1 %vm54_vm2, %v2732_v22 }
  0x1f   :  { %3013 = vmatpush3.bf16.msra.mxu0 %v267_v6  ;;  %3014 = vmatprep.mubr.msk.bf16.mxu0 %vm3366_vm1, %v3365_v0 }
  0x20   :  { %3024 = vmatprep.subr.bf16.mxu0 %v3365_v0  ;;  %3043 = vmatpush3.bf16.msra.mxu1 %v474_v17 }
  0x21   :  { %3044 = vmatprep.mubr.msk.bf16.mxu1 %vm3366_vm1, %v3365_v0  ;;  %3054 = vmatprep.subr.bf16.mxu1 %v3365_v0 }
  0x26   :  { %3015 = vmatmul.mubr.msk.bf16.vlgmr.msra.gmra.mrb[16].mxu0 %vm54_vm2, %v2724_v24  ;;  %3045 = vmatmul.mubr.msk.bf16.vlgmr.msra.gmra.mrb[16].mxu1 %vm54_vm2, %v2736_v25 }
  0x27   :  { %3025 = vmatpush3.bf16.msra.mxu0 %v474_v17  ;;  %3026 = vmatprep.mubr.msk.bf16.mxu0 %vm3366_vm1, %v3365_v0 }
  0x28   :  { %3036 = vmatprep.subr.bf16.mxu0 %v3365_v0  ;;  %3055 = vmatpush3.bf16.msra.mxu1 %v681_v26 }
  0x29   :  { %3056 = vmatprep.mubr.msk.bf16.mxu1 %vm3366_vm1, %v3365_v0  ;;  %3066 = vmatprep.subr.bf16.mxu1 %v3365_v0 }
  0x2e   :  { %3027 = vmatmul.mubr.msk.bf16.vlgmr.msra.gmra.mrb[20].mxu0 %vm54_vm2, %v2728_v27  ;;  %3057 = vmatmul.mubr.msk.bf16.vlgmr.msra.gmra.mrb[20].mxu1 %vm54_vm2, %v2742_v28 }
  0x2f   :  { %3037 = vmatpush3.bf16.msra.mxu0 %v474_v17  ;;  %3038 = vmatprep.mubr.msk.bf16.mxu0 %vm3366_vm1, %v3365_v0 }
  0x30   :  { %3048 = vmatprep.subr.bf16.mxu0 %v3365_v0  ;;  %3067 = vmatpush3.bf16.msra.mxu1 %v681_v26 }
  0x31   :  { %3068 = vmatprep.mubr.msk.bf16.mxu1 %vm3366_vm1, %v3365_v0  ;;  %3078 = vmatprep.subr.bf16.mxu1 %v3365_v0 }
  0x36   :  { %3039 = vmatmul.mubr.msk.bf16.vlgmr.msra.gmra.mrb[24].mxu0 %vm54_vm2, %v2734_v30  ;;  %3069 = vmatmul.mubr.msk.bf16.vlgmr.msra.gmra.mrb[24].mxu1 %vm54_vm2, %v2746_v31 }
  0x37   :  { %3049 = vmatpush3.bf16.msra.mxu0 %v681_v26  ;;  %3050 = vmatprep.mubr.msk.bf16.mxu0 %vm3366_vm1, %v3365_v0 }
  0x38   :  { %3060 = vmatprep.subr.bf16.mxu0 %v3365_v0  ;;  %3079 = vmatpush3.bf16.msra.mxu1 %v888_v32 }
  0x39   :  { %3080 = vmatprep.mubr.msk.bf16.mxu1 %vm3366_vm1, %v3365_v0  ;;  %3090 = vmatprep.subr.bf16.mxu1 %v3365_v0 }
  0x3e   :  { %3051 = vmatmul.mubr.msk.bf16.vlgmr.msra.gmra.mrb[28].mxu0 %vm54_vm2, %v2738_v33  ;;  %3081 = vmatmul.mubr.msk.bf16.vlgmr.msra.gmra.mrb[28].mxu1 %vm54_vm2, %v2752_v34 }
  0x3f   :  { %3061 = vmatpush3.bf16.msra.mxu0 %v681_v26  ;;  %3062 = vmatprep.mubr.msk.bf16.mxu0 %vm3366_vm1, %v3365_v0 }
  0x40   :  { %3072 = vmatprep.subr.bf16.mxu0 %v3365_v0  ;;  %3091 = vmatpush3.bf16.msra.mxu1 %v888_v32 }
  0x41   :  { %3092 = vmatprep.mubr.msk.bf16.mxu1 %vm3366_vm1, %v3365_v0  ;;  %3102 = vmatprep.subr.bf16.mxu1 %v3365_v0 }
  0x46   :  { %3063 = vmatmul.mubr.msk.bf16.vlgmr.msra.gmra.mrb[32].mxu0 %vm54_vm2, %v2744_v35  ;;  %3093 = vmatmul.mubr.msk.bf16.vlgmr.msra.gmra.mrb[32].mxu1 %vm54_vm2, %v2756_v36 }
  0x47   :  { %3073 = vmatpush3.bf16.msra.mxu0 %v888_v32  ;;  %3074 = vmatprep.mubr.msk.bf16.mxu0 %vm3366_vm1, %v3365_v0 }
  0x48   :  { %3084 = vmatprep.subr.bf16.mxu0 %v3365_v0  ;;  %3103 = vmatpush3.bf16.msra.mxu1 %v3477_v10 }
  0x49   :  { %3104 = vmatprep.mubr.msk.bf16.mxu1 %vm3366_vm1, %v3365_v0  ;;  %3114 = vmatprep.subr.bf16.mxu1 %v3365_v0 }
  0x4e   :  { %3075 = vmatmul.mubr.msk.bf16.vlgmr.msra.gmra.mrb[36].mxu0 %vm54_vm2, %v2748_v37  ;;  %3105 = vmatmul.mubr.msk.bf16.vlgmr.msra.gmra.mrb[36].mxu1 %vm54_vm2, %v2762_v38 }
  0x4f   :  { %3085 = vmatpush3.bf16.msra.mxu0 %v888_v32  ;;  %3086 = vmatprep.mubr.msk.bf16.mxu0 %vm3366_vm1, %v3365_v0 }
  0x50   :  { %3096 = vmatprep.subr.bf16.mxu0 %v3365_v0  ;;  %3115 = vmatpush3.bf16.msra.mxu1 %v3477_v10 }
  0x51   :  { %3116 = vmatprep.mubr.msk.bf16.mxu1 %vm3366_vm1, %v3365_v0  ;;  %3126 = vmatprep.subr.bf16.mxu1 %v3365_v0 }
  0x56   :  { %3087 = vmatmul.mubr.msk.bf16.vlgmr.msra.gmra.mrb[40].mxu0 %vm54_vm2, %v2754_v39  ;;  %3117 = vmatmul.mubr.msk.bf16.vlgmr.msra.gmra.mrb[40].mxu1 %vm54_vm2, %v2766_v40 }
  0x57   :  { %3097 = vmatpush3.bf16.msra.mxu0 %v3477_v10  ;;  %3098 = vmatprep.mubr.msk.bf16.mxu0 %vm3366_vm1, %v3365_v0 }
  0x58   :  { %3108 = vmatprep.subr.bf16.mxu0 %v3365_v0  ;;  %3127 = vmatpush3.bf16.msra.mxu1 %v3492_v14 }
  0x59   :  { %3128 = vmatprep.mubr.msk.bf16.mxu1 %vm3366_vm1, %v3365_v0  ;;  %3138 = vmatprep.subr.bf16.mxu1 %v3365_v0 }
  0x5e   :  { %3099 = vmatmul.mubr.msk.bf16.vlgmr.msra.gmra.mrb[44].mxu0 %vm54_vm2, %v2758_v41  ;;  %3129 = vmatmul.mubr.msk.bf16.vlgmr.msra.gmra.mrb[44].mxu1 %vm54_vm2, %v2772_v42 }
  0x5f   :  { %3109 = vmatpush3.bf16.msra.mxu0 %v3477_v10  ;;  %3110 = vmatprep.mubr.msk.bf16.mxu0 %vm3366_vm1, %v3365_v0 }
  0x60   :  { %3120 = vmatprep.subr.bf16.mxu0 %v3365_v0  ;;  %3139 = vmatpush3.bf16.msra.mxu1 %v3492_v14 }
  0x61   :  { %3140 = vmatprep.mubr.msk.bf16.mxu1 %vm3366_vm1, %v3365_v0  ;;  %3150 = vmatprep.subr.bf16.mxu1 %v3365_v0 }
  0x66   :  { %3111 = vmatmul.mubr.msk.bf16.vlgmr.msra.gmra.mrb[48].mxu0 %vm54_vm2, %v2764_v43  ;;  %3141 = vmatmul.mubr.msk.bf16.vlgmr.msra.gmra.mrb[48].mxu1 %vm54_vm2, %v2776_v44 }
  0x67   :  { %3121 = vmatpush3.bf16.msra.mxu0 %v3492_v14  ;;  %3122 = vmatprep.mubr.msk.bf16.mxu0 %vm3366_vm1, %v3365_v0 }
  0x68   :  { %3132 = vmatprep.subr.bf16.mxu0 %v3365_v0  ;;  %3151 = vmatpush3.bf16.msra.mxu1 %v3502_v18 }
  0x69   :  { %3152 = vmatprep.mubr.msk.bf16.mxu1 %vm3366_vm1, %v3365_v0  ;;  %3162 = vmatprep.subr.bf16.mxu1 %v3365_v0 }
  0x6e   :  { %3123 = vmatmul.mubr.msk.bf16.vlgmr.msra.gmra.mrb[52].mxu0 %vm54_vm2, %v2768_v45  ;;  %3153 = vmatmul.mubr.msk.bf16.vlgmr.msra.gmra.mrb[52].mxu1 %vm54_vm2, %v2782_v46 }
  0x6f   :  { %3133 = vmatpush3.bf16.msra.mxu0 %v3492_v14  ;;  %3134 = vmatprep.mubr.msk.bf16.mxu0 %vm3366_vm1, %v3365_v0 }
  0x70   :  { %3144 = vmatprep.subr.bf16.mxu0 %v3365_v0  ;;  %3163 = vmatpush3.bf16.msra.mxu1 %v3502_v18 }
  0x71   :  { %3164 = vmatprep.mubr.msk.bf16.mxu1 %vm3366_vm1, %v3365_v0  ;;  %3174 = vmatprep.subr.bf16.mxu1 %v3365_v0 }
  0x76   :  { %3135 = vmatmul.mubr.msk.bf16.vlgmr.msra.gmra.mrb[56].mxu0 %vm54_vm2, %v2774_v47  ;;  %3165 = vmatmul.mubr.msk.bf16.vlgmr.msra.gmra.mrb[56].mxu1 %vm54_vm2, %v2786_v48 }
  0x77   :  { %3145 = vmatpush3.bf16.msra.mxu0 %v3502_v18  ;;  %3146 = vmatprep.mubr.msk.bf16.mxu0 %vm3366_vm1, %v3365_v0 }
  0x78   :  { %3156 = vmatprep.subr.bf16.mxu0 %v3365_v0  ;;  %3175 = vmatpush3.bf16.msra.mxu1 %v3513_v20 }
  0x79   :  { %3176 = vmatprep.mubr.msk.bf16.mxu1 %vm3366_vm1, %v3365_v0  ;;  %3186 = vmatprep.subr.bf16.mxu1 %v3365_v0 }
  0x7e   :  { %3147 = vmatmul.mubr.msk.bf16.vlgmr.msra.gmra.mrb[60].mxu0 %vm54_vm2, %v2778_v49  ;;  %3177 = vmatmul.mubr.msk.bf16.vlgmr.msra.gmra.mrb[60].mxu1 %vm54_vm2, %v2792_v50 }
  0x7f   :  { %3157 = vmatpush3.bf16.msra.mxu0 %v3502_v18  ;;  %3158 = vmatprep.mubr.msk.bf16.mxu0 %vm3366_vm1, %v3365_v0 }
  0x80   :  { %3168 = vmatprep.subr.bf16.mxu0 %v3365_v0  ;;  %3187 = vmatpush3.bf16.msra.mxu1 %v3513_v20 }
  0x81   :  { %3188 = vmatprep.mubr.msk.bf16.mxu1 %vm3366_vm1, %v3365_v0  ;;  %3204 = vmatprep.subr.bf16.mxu1 %v3365_v0 }
  0x86   :  { %3159 = vmatmul.mubr.msk.bf16.vlgmr.msra.gmra.mrb[64].mxu0 %vm54_vm2, %v2784_v51  ;;  %3189 = vmatmul.mubr.msk.bf16.vlgmr.msra.gmra.mrb[64].mxu1 %vm54_vm2, %v2796_v52 }
  0x87   :  { %3169 = vmatpush3.bf16.msra.mxu0 %v3513_v20  ;;  %3170 = vmatprep.mubr.msk.bf16.mxu0 %vm3366_vm1, %v3365_v0 }
  0x88   :  { %3180 = vmatprep.subr.bf16.mxu0 %v3365_v0  ;;  %3212 = vmatprep.mubr.msk.bf16.mxu1 %vm3366_vm1, %v3365_v0 }
  0x8e   :  { %3171 = vmatmul.mubr.msk.bf16.vlgmr.msra.gmra.mrb[68].mxu0 %vm54_vm2, %v2788_v53 }
  0x8f   :  { %3181 = vmatpush3.bf16.msra.mxu0 %v3513_v20  ;;  %3182 = vmatprep.mubr.msk.bf16.mxu0 %vm3366_vm1, %v3365_v0 }
  0x90   :  { %3192 = vmatprep.subr.bf16.mxu0 %v3365_v0 }
  0x96   :  { %3183 = vmatmul.mubr.msk.bf16.vlgmr.msra.gmra.mrb[72].mxu0 %vm54_vm2, %v2794_v54 }
  0x97   :  { %3200 = vmatprep.mubr.msk.bf16.mxu0 %vm3366_vm1, %v3365_v0 }
  0xd9   :  { %v96_v55 = vpop.f32.mrb[0].mxu0  ;;  %v234_v56 = vpop.f32.mrb[0].mxu1 }
  0xda   :  { %v2980_v57 = vpop.f32.mrb[1].mxu0  ;;  %v2998_v58 = vpop.f32.mrb[1].mxu1  ;;  %v97_v1 = vadd.f32 %v3753_v63, %v96_v55  ;;  %v235_v14 = vadd.f32 %v3753_v63, %v234_v56 }
  0xdb   :  { %v99_v59 = vpop.f32.mrb[2].mxu0  ;;  %v237_v60 = vpop.f32.mrb[2].mxu1 }
  0xdc   :  { %v2981_v61 = vpop.f32.mrb[3].mxu0  ;;  %v2999_v62 = vpop.f32.mrb[3].mxu1  ;;  %v102_v9 = vmax.f32 %v97_v1, 0.0  ;;  %v240_v17 = vmax.f32 %v235_v14, 0.0 }
  0xe1   :  { %v142_v2 = vpop.f32.mrb[4].mxu0  ;;  %v349_v3 = vpop.f32.mrb[4].mxu1 }
  0xe2   :  { %v143_v4 = vadd.f32 %v3753_v63, %v142_v2  ;;  %v2986_v5 = vpop.f32.mrb[5].mxu0  ;;  %v3010_v6 = vpop.f32.mrb[5].mxu1  ;;  %v350_v27 = vadd.f32 %v3753_v63, %v349_v3 }
  0xe3   :  { %v145_v7 = vpop.f32.mrb[6].mxu0  ;;  %v352_v8 = vpop.f32.mrb[6].mxu1 }
  0xe4   :  { %v148_v10 = vmax.f32 %v143_v4, 0.0  ;;  %v2987_v11 = vpop.f32.mrb[7].mxu0  ;;  %v3011_v12 = vpop.f32.mrb[7].mxu1  ;;  %v355_v32 = vmax.f32 %v350_v27, 0.0 }
  0xe6   :  { %v241_v13 = vmax.f32 %v102_v9, %v148_v10 }
  0xe9   :  { %v188_v15 = vpop.f32.mrb[8].mxu0  ;;  %v441_v16 = vpop.f32.mrb[8].mxu1 }
  0xea   :  { %v189_v18 = vadd.f32 %v3753_v63, %v188_v15  ;;  %v2992_v19 = vpop.f32.mrb[9].mxu0  ;;  %v3022_v20 = vpop.f32.mrb[9].mxu1  ;;  %v442_v42 = vadd.f32 %v3753_v63, %v441_v16 }
  0xeb   :  { %v191_v21 = vpop.f32.mrb[10].mxu0  ;;  %v444_v22 = vpop.f32.mrb[10].mxu1 }
  0xec   :  { %v194_v23 = vmax.f32 %v189_v18, 0.0  ;;  %v2993_v24 = vpop.f32.mrb[11].mxu0  ;;  %v3023_v25 = vpop.f32.mrb[11].mxu1  ;;  %v447_v45 = vmax.f32 %v442_v42, 0.0 }
  0xee   :  { %v242_v26 = vmax.f32 %v194_v23, %v240_v17 }
  0xf0   :  { %v243_v28 = vmax.f32 %v241_v13, %v242_v26 }
  0xf1   :  { %v303_v29 = vpop.f32.mrb[12].mxu0  ;;  %v556_v30 = vpop.f32.mrb[12].mxu1 }
  0xf2   :  { %v244_v31 = vpack.c.bf16 %v243_v28, %v243_v28  ;;  %v304_v33 = vadd.f32 %v3753_v63, %v303_v29  ;;  %v3004_v34 = vpop.f32.mrb[13].mxu0  ;;  %v3034_v35 = vpop.f32.mrb[13].mxu1  ;;  %v557_v55 = vadd.f32 %v3753_v63, %v556_v30 }
  0xf3   :  { %v306_v36 = vpop.f32.mrb[14].mxu0  ;;  %v559_v37 = vpop.f32.mrb[14].mxu1 }
  0xf4   :  { %246 = vst.msk [vmem:[#allocation2] sm:$0xf] %vm245_vm3, %v244_v31  ;;  %v309_v38 = vmax.f32 %v304_v33, 0.0  ;;  %v3005_v39 = vpop.f32.mrb[15].mxu0  ;;  %v3035_v40 = vpop.f32.mrb[15].mxu1  ;;  %v562_v60 = vmax.f32 %v557_v55, 0.0 }
  0xf6   :  { %v448_v41 = vmax.f32 %v309_v38, %v355_v32 }
  0xf9   :  { %v395_v43 = vpop.f32.mrb[16].mxu0  ;;  %v648_v44 = vpop.f32.mrb[16].mxu1 }
  0xfa   :  { %v396_v46 = vadd.f32 %v3753_v63, %v395_v43  ;;  %v3016_v47 = vpop.f32.mrb[17].mxu0  ;;  %v3046_v48 = vpop.f32.mrb[17].mxu1  ;;  %v649_v8 = vadd.f32 %v3753_v63, %v648_v44 }
  0xfb   :  { %v398_v49 = vpop.f32.mrb[18].mxu0  ;;  %v651_v50 = vpop.f32.mrb[18].mxu1 }
  0xfc   :  { %v401_v51 = vmax.f32 %v396_v46, 0.0  ;;  %v3017_v52 = vpop.f32.mrb[19].mxu0  ;;  %v3047_v53 = vpop.f32.mrb[19].mxu1  ;;  %v654_v11 = vmax.f32 %v649_v8, 0.0  ;;  %v3322_v8 = vld [vmem:[%s4008_s3 + $0x10] sm:$0xff]  }
  0xfe   :  { %v449_v54 = vmax.f32 %v401_v51, %v447_v45 }
 0x100   :  { %v450_v56 = vmax.f32 %v448_v41, %v449_v54 }
 0x101   :  { %v510_v57 = vpop.f32.mrb[20].mxu0  ;;  %v763_v58 = vpop.f32.mrb[20].mxu1 }
 0x102   :  { %v451_v59 = vpack.c.bf16 %v450_v56, %v450_v56  ;;  %v511_v61 = vadd.f32 %v3753_v63, %v510_v57  ;;  %v3028_v62 = vpop.f32.mrb[21].mxu0  ;;  %v3058_v1 = vpop.f32.mrb[21].mxu1  ;;  %v764_v22 = vadd.f32 %v3753_v63, %v763_v58 }
 0x103   :  { %v513_v2 = vpop.f32.mrb[22].mxu0  ;;  %v766_v3 = vpop.f32.mrb[22].mxu1 }
 0x104   :  { %453 = vst.msk [vmem:[#allocation2 + $0x4] sm:$0xf] %vm245_vm3, %v451_v59  ;;  %v516_v4 = vmax.f32 %v511_v61, 0.0  ;;  %v3029_v5 = vpop.f32.mrb[23].mxu0  ;;  %v3059_v6 = vpop.f32.mrb[23].mxu1  ;;  %v769_v27 = vmax.f32 %v764_v22, 0.0 }
 0x105   :  { %v3320_v61 = vld [vmem:[%s4008_s3] sm:$0xff]   ;;  %v3321_v5 = vld [vmem:[%s4008_s3 + $0x8] sm:$0xff]  }
 0x106   :  { %v655_v7 = vmax.f32 %v516_v4, %v562_v60  ;;  %3193 = vmatpush3.bf16.msra.mxu0 %v3320_v61 }
 0x107   :  { %3194 = vmatprep.subr.bf16.mxu0 %v3365_v0 }
 0x109   :  { %v602_v9 = vpop.f32.mrb[24].mxu0  ;;  %v855_v10 = vpop.f32.mrb[24].mxu1 }
 0x10a   :  { %v603_v12 = vadd.f32 %v3753_v63, %v602_v9  ;;  %v3040_v13 = vpop.f32.mrb[25].mxu0  ;;  %v3070_v14 = vpop.f32.mrb[25].mxu1  ;;  %v856_v37 = vadd.f32 %v3753_v63, %v855_v10  ;;  %3195 = vmatpush3.bf16.msra.mxu0 %v3321_v5 }
 0x10b   :  { %v605_v15 = vpop.f32.mrb[26].mxu0  ;;  %v3308_v16 = vld [vmem:[#allocation2 + $0x4] ss:$0 sps:$4 sm:$0xff]   ;;  %v858_v17 = vpop.f32.mrb[26].mxu1  ;;  %3196 = vmatprep.subr.bf16.mxu0 %v3365_v0 }
 0x10c   :  { %v608_v18 = vmax.f32 %v603_v12, 0.0  ;;  %v3041_v19 = vpop.f32.mrb[27].mxu0  ;;  %v3071_v20 = vpop.f32.mrb[27].mxu1  ;;  %1910 = vrot.lane.b32.xlu0 %v3308_v16, %s3367_s0  ;;  %v861_v40 = vmax.f32 %v856_v37, 0.0  ;;  %v3325_v37 = vld [vmem:[%s4008_s3 + $0x8] sm:$0xff]  }
 0x10d   :  { %v3323_v20 = vld [vmem:[%s4008_s3 + $0x18] sm:$0xff]  }
 0x10e   :  { %v656_v21 = vmax.f32 %v608_v18, %v654_v11  ;;  %3197 = vmatpush3.bf16.msra.mxu0 %v3322_v8 }
 0x10f   :  { %3198 = vmatprep.subr.bf16.mxu0 %v3365_v0 }
 0x110   :  { %v657_v23 = vmax.f32 %v655_v7, %v656_v21 }
 0x111   :  { %v717_v24 = vpop.f32.mrb[28].mxu0  ;;  %v970_v25 = vpop.f32.mrb[28].mxu1 }
 0x112   :  { %v658_v26 = vpack.c.bf16 %v657_v23, %v657_v23  ;;  %v718_v28 = vadd.f32 %v3753_v63, %v717_v24  ;;  %v3052_v29 = vpop.f32.mrb[29].mxu0  ;;  %v3082_v30 = vpop.f32.mrb[29].mxu1  ;;  %v971_v51 = vadd.f32 %v3753_v63, %v970_v25  ;;  %3199 = vmatpush3.bf16.msra.mxu0 %v3323_v20 }
 0x113   :  { %v720_v31 = vpop.f32.mrb[30].mxu0  ;;  %v973_v32 = vpop.f32.mrb[30].mxu1  ;;  %3216 = vmatprep.subr.bf16.mxu0 %v3365_v0 }
 0x114   :  { %660 = vst.msk [vmem:[#allocation2 + $0x8] sm:$0xf] %vm245_vm3, %v658_v26  ;;  %v723_v33 = vmax.f32 %v718_v28, 0.0  ;;  %v3053_v34 = vpop.f32.mrb[31].mxu0  ;;  %v3083_v35 = vpop.f32.mrb[31].mxu1  ;;  %v976_v56 = vmax.f32 %v971_v51, 0.0 }
 0x115   :  { %v3324_v31 = vld [vmem:[%s4008_s3] sm:$0xff]  }
 0x116   :  { %v862_v36 = vmax.f32 %v723_v33, %v769_v27  ;;  %3205 = vmatpush3.bf16.msra.mxu1 %v3324_v31 }
 0x117   :  { %3206 = vmatprep.subr.bf16.mxu1 %v3365_v0 }
 0x119   :  { %v809_v38 = vpop.f32.mrb[32].mxu0  ;;  %v1062_v39 = vpop.f32.mrb[32].mxu1 }
 0x11a   :  { %v810_v41 = vadd.f32 %v3753_v63, %v809_v38  ;;  %v3064_v42 = vpop.f32.mrb[33].mxu0  ;;  %v3094_v43 = vpop.f32.mrb[33].mxu1  ;;  %v1063_v59 = vadd.f32 %v3753_v63, %v1062_v39  ;;  %3207 = vmatpush3.bf16.msra.mxu1 %v3325_v37 }
 0x11b   :  { %v812_v44 = vpop.f32.mrb[34].mxu0  ;;  %v3309_v45 = vld [vmem:[#allocation2 + $0x8] ss:$0 sps:$4 sm:$0xff]   ;;  %v1065_v46 = vpop.f32.mrb[34].mxu1  ;;  %3208 = vmatprep.subr.bf16.mxu1 %v3365_v0 }
 0x11c   :  { %v815_v47 = vmax.f32 %v810_v41, 0.0  ;;  %v3065_v48 = vpop.f32.mrb[35].mxu0  ;;  %v3095_v49 = vpop.f32.mrb[35].mxu1  ;;  %2025 = vrot.lane.b32.xlu1 %v3309_v45, %s3367_s0  ;;  %v1068_v7 = vmax.f32 %v1063_v59, 0.0 }
 0x11e   :  { %v863_v50 = vmax.f32 %v815_v47, %v861_v40  ;;  %v3326_v40 = vld [vmem:[%s4008_s3 + $0x10] sm:$0xff]   ;;  %v3327_v47 = vld [vmem:[%s4008_s3 + $0x18] sm:$0xff]  }
 0x11f   :  { %3209 = vmatpush3.bf16.msra.mxu1 %v3326_v40 }
 0x120   :  { %v864_v52 = vmax.f32 %v862_v36, %v863_v50  ;;  %3210 = vmatprep.subr.bf16.mxu1 %v3365_v0 }
 0x121   :  { %v924_v53 = vpop.f32.mrb[36].mxu0  ;;  %v1177_v54 = vpop.f32.mrb[36].mxu1 }
 0x122   :  { %v865_v55 = vpack.c.bf16 %v864_v52, %v864_v52  ;;  %v925_v57 = vadd.f32 %v3753_v63, %v924_v53  ;;  %v3076_v58 = vpop.f32.mrb[37].mxu0  ;;  %v3106_v60 = vpop.f32.mrb[37].mxu1  ;;  %v1178_v22 = vadd.f32 %v3753_v63, %v1177_v54 }
 0x123   :  { %v927_v62 = vpop.f32.mrb[38].mxu0  ;;  %v1180_v1 = vpop.f32.mrb[38].mxu1  ;;  %3211 = vmatpush3.bf16.msra.mxu1 %v3327_v47 }
 0x124   :  { %867 = vst.msk [vmem:[#allocation2 + $0xc] sm:$0xf] %vm245_vm3, %v865_v55  ;;  %v930_v2 = vmax.f32 %v925_v57, 0.0  ;;  %v3077_v3 = vpop.f32.mrb[39].mxu0  ;;  %v3107_v4 = vpop.f32.mrb[39].mxu1  ;;  %v1183_v27 = vmax.f32 %v1178_v22, 0.0  ;;  %3228 = vmatprep.subr.bf16.mxu1 %v3365_v0 }
 0x126   :  { %v1069_v6 = vmax.f32 %v930_v2, %v976_v56 }
 0x129   :  { %v1016_v9 = vpop.f32.mrb[40].mxu0  ;;  %v1269_v10 = vpop.f32.mrb[40].mxu1 }
 0x12a   :  { %v1017_v11 = vadd.f32 %v3753_v63, %v1016_v9  ;;  %v3088_v12 = vpop.f32.mrb[41].mxu0  ;;  %v3118_v13 = vpop.f32.mrb[41].mxu1  ;;  %v1270_v39 = vadd.f32 %v3753_v63, %v1269_v10 }
 0x12b   :  { %v1019_v14 = vpop.f32.mrb[42].mxu0  ;;  %v3310_v15 = vld [vmem:[#allocation2 + $0xc] ss:$0 sps:$4 sm:$0xff]   ;;  %v1272_v16 = vpop.f32.mrb[42].mxu1 }
 0x12c   :  { %v1022_v17 = vmax.f32 %v1017_v11, 0.0  ;;  %v3089_v18 = vpop.f32.mrb[43].mxu0  ;;  %v3119_v19 = vpop.f32.mrb[43].mxu1  ;;  %1915 = vrot.lane.b32.xlu0 %v3310_v15, %s3368_s18  ;;  %v1275_v43 = vmax.f32 %v1270_v39, 0.0 }
 0x12e   :  { %v1070_v21 = vmax.f32 %v1022_v17, %v1068_v7 }
 0x130   :  { %v1071_v23 = vmax.f32 %v1069_v6, %v1070_v21 }
 0x131   :  { %v1131_v24 = vpop.f32.mrb[44].mxu0  ;;  %v1384_v25 = vpop.f32.mrb[44].mxu1 }
 0x132   :  { %v1072_v26 = vpack.c.bf16 %v1071_v23, %v1071_v23  ;;  %v1132_v28 = vadd.f32 %v3753_v63, %v1131_v24  ;;  %v3100_v29 = vpop.f32.mrb[45].mxu0  ;;  %v3130_v30 = vpop.f32.mrb[45].mxu1  ;;  %v1385_v56 = vadd.f32 %v3753_v63, %v1384_v25 }
 0x133   :  { %v1134_v32 = vpop.f32.mrb[46].mxu0  ;;  %v1387_v33 = vpop.f32.mrb[46].mxu1 }
 0x134   :  { %1074 = vst.msk [vmem:[#allocation2 + $0x10] sm:$0xf] %vm245_vm3, %v1072_v26  ;;  %v1137_v34 = vmax.f32 %v1132_v28, 0.0  ;;  %v3101_v35 = vpop.f32.mrb[47].mxu0  ;;  %v3131_v36 = vpop.f32.mrb[47].mxu1  ;;  %v1390_v62 = vmax.f32 %v1385_v56, 0.0 }
 0x136   :  { %v1276_v38 = vmax.f32 %v1137_v34, %v1183_v27 }
 0x139   :  { %v1223_v41 = vpop.f32.mrb[48].mxu0  ;;  %v1476_v42 = vpop.f32.mrb[48].mxu1 }
 0x13a   :  { %v1224_v44 = vadd.f32 %v3753_v63, %v1223_v41  ;;  %v3112_v45 = vpop.f32.mrb[49].mxu0  ;;  %v3142_v46 = vpop.f32.mrb[49].mxu1  ;;  %v1477_v10 = vadd.f32 %v3753_v63, %v1476_v42 }
 0x13b   :  { %v1226_v48 = vpop.f32.mrb[50].mxu0  ;;  %v3311_v49 = vld [vmem:[#allocation2 + $0x10] ss:$0 sps:$4 sm:$0xff]   ;;  %v1479_v50 = vpop.f32.mrb[50].mxu1 }
 0x13c   :  { %v1229_v51 = vmax.f32 %v1224_v44, 0.0  ;;  %v3113_v52 = vpop.f32.mrb[51].mxu0  ;;  %v3312_v53 = vld [vmem:[#allocation2 + $0x10] ss:$0 sps:$4 sm:$0xff]   ;;  %2030 = vrot.lane.b32.xlu0 %v3311_v49, %s3368_s18  ;;  %v3143_v54 = vpop.f32.mrb[51].mxu1  ;;  %v1482_v13 = vmax.f32 %v1477_v10, 0.0 }
 0x13d   :  { %1920 = vrot.lane.b32.xlu1 %v3312_v53, %s3369_s26  ;;  %v3313_v57 = vld [vmem:[#allocation2 + $0x10] ss:$0 sps:$4 sm:$0xff]  }
 0x13e   :  { %v1277_v55 = vmax.f32 %v1229_v51, %v1275_v43 }
 0x140   :  { %v1278_v58 = vmax.f32 %v1276_v38, %v1277_v55  ;;  %2136 = vrot.lane.b32.xlu0 %v3313_v57, %s3367_s0 }
 0x141   :  { %v1338_v59 = vpop.f32.mrb[52].mxu0  ;;  %v1591_v60 = vpop.f32.mrb[52].mxu1 }
 0x142   :  { %v1279_v61 = vpack.c.bf16 %v1278_v58, %v1278_v58  ;;  %v1339_v1 = vadd.f32 %v3753_v63, %v1338_v59  ;;  %v3124_v2 = vpop.f32.mrb[53].mxu0  ;;  %v3154_v3 = vpop.f32.mrb[53].mxu1  ;;  %v1592_v25 = vadd.f32 %v3753_v63, %v1591_v60 }
 0x143   :  { %v1341_v4 = vpop.f32.mrb[54].mxu0  ;;  %v1594_v5 = vpop.f32.mrb[54].mxu1 }
 0x144   :  { %1281 = vst.msk [vmem:[#allocation2 + $0x14] sm:$0xf] %vm245_vm3, %v1279_v61  ;;  %v1344_v6 = vmax.f32 %v1339_v1, 0.0  ;;  %v3125_v7 = vpop.f32.mrb[55].mxu0  ;;  %v3155_v8 = vpop.f32.mrb[55].mxu1  ;;  %v1597_v30 = vmax.f32 %v1592_v25, 0.0 }
 0x145   :  { %v3329_v25 = vld [vmem:[%s4008_s3 + $0x8] sm:$0xff]  }
 0x146   :  { %v1483_v9 = vmax.f32 %v1344_v6, %v1390_v62 }
 0x149   :  { %v1430_v11 = vpop.f32.mrb[56].mxu0  ;;  %v1683_v12 = vpop.f32.mrb[56].mxu1 }
 0x14a   :  { %v1431_v14 = vadd.f32 %v3753_v63, %v1430_v11  ;;  %v3136_v15 = vpop.f32.mrb[57].mxu0  ;;  %v3166_v16 = vpop.f32.mrb[57].mxu1  ;;  %v1684_v40 = vadd.f32 %v3753_v63, %v1683_v12 }
 0x14b   :  { %v1433_v17 = vpop.f32.mrb[58].mxu0  ;;  %v3314_v18 = vld [vmem:[#allocation2 + $0x14] ss:$0 sps:$4 sm:$0xff]   ;;  %v1686_v19 = vpop.f32.mrb[58].mxu1 }
 0x14c   :  { %v1436_v20 = vmax.f32 %v1431_v14, 0.0  ;;  %v3137_v21 = vpop.f32.mrb[59].mxu0  ;;  %v3315_v22 = vld [vmem:[#allocation2 + $0x14] ss:$0 sps:$4 sm:$0xff]   ;;  %2247 = vrot.lane.b32.xlu0 %v3314_v18, %s3367_s0  ;;  %v3167_v23 = vpop.f32.mrb[59].mxu1  ;;  %v1689_v43 = vmax.f32 %v1684_v40, 0.0 }
 0x14d   :  { %2035 = vrot.lane.b32.xlu1 %v3315_v22, %s3369_s26  ;;  %v1903_v19 = vld [vmem:[#allocation2] sm:$0xf]  ;;  %v2129_v40 = vld [vmem:[#allocation2 + $0xc] sm:$0xf] }
 0x14e   :  { %v1484_v24 = vmax.f32 %v1436_v20, %v1482_v13  ;;  %v3328_v21 = vld [vmem:[%s4008_s3] sm:$0xff]  }
 0x150   :  { %v1485_v26 = vmax.f32 %v1483_v9, %v1484_v24 }
 0x151   :  { %v1545_v27 = vpop.f32.mrb[60].mxu0  ;;  %v1798_v28 = vpop.f32.mrb[60].mxu1 }
 0x152   :  { %v1486_v29 = vpack.c.bf16 %v1485_v26, %v1485_v26  ;;  %v1546_v31 = vadd.f32 %v3753_v63, %v1545_v27  ;;  %v3148_v32 = vpop.f32.mrb[61].mxu0  ;;  %v3178_v33 = vpop.f32.mrb[61].mxu1  ;;  %v1799_v54 = vadd.f32 %v3753_v63, %v1798_v28  ;;  %v3330_v26 = vld [vmem:[%s4008_s3 + $0x10] sm:$0xff]   ;;  %v3331_v27 = vld [vmem:[%s4008_s3 + $0x18] sm:$0xff]  }
 0x153   :  { %v1548_v34 = vpop.f32.mrb[62].mxu0  ;;  %v1801_v35 = vpop.f32.mrb[62].mxu1 }
 0x154   :  { %1488 = vst.msk [vmem:[#allocation2 + $0x18] sm:$0xf] %vm245_vm3, %v1486_v29  ;;  %v1551_v36 = vmax.f32 %v1546_v31, 0.0  ;;  %v3149_v37 = vpop.f32.mrb[63].mxu0  ;;  %v3179_v38 = vpop.f32.mrb[63].mxu1  ;;  %v1804_v58 = vmax.f32 %v1799_v54, 0.0 }
 0x155   :  { %v2018_v29 = vld [vmem:[#allocation2 + $0x4] sm:$0xf]  ;;  %v3333_v35 = vld [vmem:[%s4008_s3 + $0x8] sm:$0xff]   ;;  %v3335_v37 = vld [vmem:[%s4008_s3 + $0x18] sm:$0xff]  }
 0x156   :  { %v1690_v39 = vmax.f32 %v1551_v36, %v1597_v30  ;;  %v3332_v31 = vld [vmem:[%s4008_s3] sm:$0xff]   ;;  %v3334_v36 = vld [vmem:[%s4008_s3 + $0x10] sm:$0xff]  }
 0x159   :  { %v1637_v41 = vpop.f32.mrb[64].mxu0  ;;  %v1890_v42 = vpop.f32.mrb[64].mxu1 }
 0x15a   :  { %v1638_v44 = vadd.f32 %v3753_v63, %v1637_v41  ;;  %v3160_v45 = vpop.f32.mrb[65].mxu0  ;;  %v3190_v46 = vpop.f32.mrb[65].mxu1  ;;  %v1891_v3 = vadd.f32 %v3753_v63, %v1890_v42 }
 0x15b   :  { %v1640_v47 = vpop.f32.mrb[66].mxu0  ;;  %v3316_v48 = vld [vmem:[#allocation2 + $0x18] ss:$0 sps:$4 sm:$0xff]   ;;  %v1893_v49 = vpop.f32.mrb[66].mxu1 }
 0x15c   :  { %v1643_v50 = vmax.f32 %v1638_v44, 0.0  ;;  %v3161_v51 = vpop.f32.mrb[67].mxu0  ;;  %v3191_v52 = vpop.f32.mrb[67].mxu1  ;;  %2141 = vrot.lane.b32.xlu1 %v3316_v48, %s3368_s18  ;;  %v1896_v5 = vmax.f32 %v1891_v3, 0.0  ;;  %v2240_v47 = vld [vmem:[#allocation2 + $0x10] sm:$0xf] }
 0x15d   :  { %v2801_v52 = vld [vmem:[%s4009_s4] ss:$0 sm:$0xff] }
 0x15e   :  { %v1691_v53 = vmax.f32 %v1643_v50, %v1689_v43 }
 0x160   :  { %v1692_v55 = vmax.f32 %v1690_v39, %v1691_v53 }
 0x161   :  { %v1752_v56 = vpop.f32.mrb[68].mxu0 }
 0x162   :  { %v1693_v57 = vpack.c.bf16 %v1692_v55, %v1692_v55  ;;  %v1753_v59 = vadd.f32 %v3753_v63, %v1752_v56  ;;  %v3172_v60 = vpop.f32.mrb[69].mxu0 }
 0x163   :  { %v1755_v61 = vpop.f32.mrb[70].mxu0 }
 0x164   :  { %1695 = vst.msk [vmem:[#allocation2 + $0x1c] sm:$0xf] %vm245_vm3, %v1693_v57  ;;  %v1758_v62 = vmax.f32 %v1753_v59, 0.0  ;;  %v3173_v1 = vpop.f32.mrb[71].mxu0 }
 0x166   :  { %v1897_v2 = vmax.f32 %v1758_v62, %v1804_v58 }
 0x169   :  { %v1844_v4 = vpop.f32.mrb[72].mxu0 }
 0x16a   :  { %v1845_v6 = vadd.f32 %v3753_v63, %v1844_v4  ;;  %v3184_v7 = vpop.f32.mrb[73].mxu0  ;;  %v3339_v4 = vld [vmem:[%s4010_s5] sm:$0xff]  }
 0x16b   :  { %v1847_v8 = vpop.f32.mrb[74].mxu0  ;;  %v3317_v9 = vld [vmem:[#allocation2 + $0x1c] ss:$0 sps:$4 sm:$0xff]   ;;  %v3341_v7 = vld [vmem:[%s4010_s5 + $0x10] sm:$0xff]  }
 0x16c   :  { %v1850_v10 = vmax.f32 %v1845_v6, 0.0  ;;  %v3185_v11 = vpop.f32.mrb[75].mxu0  ;;  %v3318_v12 = vld [vmem:[#allocation2 + $0x1c] ss:$0 sps:$4 sm:$0xff]   ;;  %2252 = vrot.lane.b32.xlu0 %v3317_v9, %s3368_s18  ;;  %v3340_v6 = vld [vmem:[%s4010_s5 + $0x8] sm:$0xff]  }
 0x16d   :  { %2146 = vrot.lane.b32.xlu1 %v3318_v12, %s3369_s26  ;;  %v3342_v9 = vld [vmem:[%s4010_s5 + $0x18] sm:$0xff]  }
 0x16e   :  { %v1898_v13 = vmax.f32 %v1850_v10, %v1896_v5 }
 0x170   :  { %v1899_v14 = vmax.f32 %v1897_v2, %v1898_v13 }
 0x172   :  { %v1900_v15 = vpack.c.bf16 %v1899_v14, %v1899_v14 }
 0x174   :  { %1902 = vst.msk [vmem:[#allocation2 + $0x20] sm:$0xf] %vm245_vm3, %v1900_v15 }
 0x17b   :  { %v3319_v16 = vld [vmem:[#allocation2 + $0x20] ss:$0 sps:$4 sm:$0xff]  }
 0x17c   :  { %2257 = vrot.lane.b32.xlu1 %v3319_v16, %s3369_s26  ;;  %v3343_v16 = vld [vmem:[%s4010_s5 + $0x20] sm:$0xff]  }
 0x17e   :  { %v1911_v17 = vpop.permute.xlu0 %1910 }
 0x17f   :  { %v1925_v20 = vsel %vm1922_vm4, %v1903_v19, %v1911_v17  ;;  %v3346_v19 = vld [vmem:[%s4010_s5 + $0x38] sm:$0xff]  }
 0x18e   :  { %v2026_v63 = vpop.permute.xlu1 %2025 }
 0x18f   :  { %v2039_v30 = vsel %vm1922_vm4, %v2018_v29, %v2026_v63  ;;  %v3344_v63 = vld [vmem:[%s4010_s5 + $0x28] sm:$0xff]  }
 0x190   :  { %v3348_v29 = vld [vmem:[%s4011_s7 + $0x8] sm:$0xff]  }
 0x19e   :  { %v1916_v18 = vpop.permute.xlu0 %1915 }
 0x19f   :  { %v1928_v22 = vsel %vm1926_vm5, %v1925_v20, %v1916_v18  ;;  %v3345_v18 = vld [vmem:[%s4010_s5 + $0x30] sm:$0xff]  }
 0x1ae   :  { %v2031_v28 = vpop.permute.xlu0 %2030 }
 0x1af   :  { %v1921_v23 = vpop.permute.xlu1 %1920  ;;  %v2041_v32 = vsel %vm1926_vm5, %v2039_v30, %v2031_v28  ;;  %v3347_v28 = vld [vmem:[%s4011_s7] sm:$0xff]  }
 0x1b0   :  { %v1931_v24 = vsel %vm1929_vm6, %v1928_v22, %v1921_v23 }
 0x1b1   :  { %3201 = vmatmul.mubr.msk.bf16.vlgmr.msra.gmra.mrb[76].mxu0 %vm1971_vm7, %v1931_v24 }
 0x1b2   :  { %3217 = vmatpush3.bf16.msra.mxu0 %v3328_v21  ;;  %3224 = vmatprep.mubr.msk.bf16.mxu0 %vm3366_vm1, %v3365_v0  ;;  %v2137_v38 = vpop.permute.xlu0 %2136 }
 0x1b3   :  { %3218 = vmatprep.subr.bf16.mxu0 %v3365_v0  ;;  %v2150_v41 = vsel %vm1922_vm4, %v2129_v40, %v2137_v38  ;;  %v3349_v38 = vld [vmem:[%s4011_s7 + $0x10] sm:$0xff]   ;;  %v2837_v40 = vld [vmem:[%s4013_s6] ss:$0 sm:$0xff] }
 0x1b6   :  { %3219 = vmatpush3.bf16.msra.mxu0 %v3329_v25 }
 0x1b7   :  { %3220 = vmatprep.subr.bf16.mxu0 %v3365_v0 }
 0x1ba   :  { %3221 = vmatpush3.bf16.msra.mxu0 %v3330_v26 }
 0x1bb   :  { %3222 = vmatprep.subr.bf16.mxu0 %v3365_v0 }
 0x1be   :  { %3223 = vmatpush3.bf16.msra.mxu0 %v3331_v27  ;;  %v2248_v45 = vpop.permute.xlu0 %2247 }
 0x1bf   :  { %v2036_v33 = vpop.permute.xlu1 %2035  ;;  %3240 = vmatprep.subr.bf16.mxu0 %v3365_v0  ;;  %v2261_v48 = vsel %vm1922_vm4, %v2240_v47, %v2248_v45  ;;  %v3351_v47 = vld [vmem:[%s4012_s9] sm:$0xff]  }
 0x1c0   :  { %v2043_v34 = vsel %vm1929_vm6, %v2041_v32, %v2036_v33 }
 0x1c1   :  { %3213 = vmatmul.mubr.msk.bf16.vlgmr.msra.gmra.mrb[68].mxu1 %vm1971_vm7, %v2043_v34 }
 0x1c2   :  { %3229 = vmatpush3.bf16.msra.mxu1 %v3332_v31  ;;  %3236 = vmatprep.mubr.msk.bf16.mxu1 %vm3366_vm1, %v3365_v0 }
 0x1c3   :  { %3230 = vmatprep.subr.bf16.mxu1 %v3365_v0 }
 0x1c6   :  { %3231 = vmatpush3.bf16.msra.mxu1 %v3333_v35 }
 0x1c7   :  { %3232 = vmatprep.subr.bf16.mxu1 %v3365_v0 }
 0x1ca   :  { %3233 = vmatpush3.bf16.msra.mxu1 %v3334_v36 }
 0x1cb   :  { %3234 = vmatprep.subr.bf16.mxu1 %v3365_v0 }
 0x1ce   :  { %3235 = vmatpush3.bf16.msra.mxu1 %v3335_v37  ;;  %v2142_v39 = vpop.permute.xlu1 %2141 }
 0x1cf   :  { %3260 = vmatprep.subr.bf16.mxu1 %v3365_v0  ;;  %v2152_v42 = vsel %vm1926_vm5, %v2150_v41, %v2142_v39  ;;  %v3350_v39 = vld [vmem:[%s4011_s7 + $0x18] sm:$0xff]  }
 0x1de   :  { %v2253_v46 = vpop.permute.xlu0 %2252 }
 0x1df   :  { %v2147_v43 = vpop.permute.xlu1 %2146  ;;  %v2263_v49 = vsel %vm1926_vm5, %v2261_v48, %v2253_v46 }
 0x1e0   :  { %v2154_v44 = vsel %vm1929_vm6, %v2152_v42, %v2147_v43 }
 0x1e1   :  { %3225 = vmatmul.mubr.msk.bf16.vlgmr.msra.gmra.mrb[80].mxu0 %vm1971_vm7, %v2154_v44 }
 0x1e2   :  { %3256 = vmatprep.mubr.msk.bf16.mxu0 %vm3366_vm1, %v3365_v0  ;;  %3241 = vmatpush3.bf16.msra.mxu0 %v3339_v4 }
 0x1e3   :  { %3242 = vmatprep.subr.bf16.mxu0 %v3365_v0 }
 0x1e6   :  { %3243 = vmatpush3.bf16.msra.mxu0 %v3340_v6 }
 0x1e7   :  { %3244 = vmatprep.subr.bf16.mxu0 %v3365_v0 }
 0x1ea   :  { %3245 = vmatpush3.bf16.msra.mxu0 %v3341_v7 }
 0x1eb   :  { %3246 = vmatprep.subr.bf16.mxu0 %v3365_v0 }
 0x1ee   :  { %v2258_v50 = vpop.permute.xlu1 %2257  ;;  %3247 = vmatpush3.bf16.msra.mxu0 %v3342_v9 }
 0x1ef   :  { %v2265_v51 = vsel %vm1929_vm6, %v2263_v49, %v2258_v50  ;;  %3248 = vmatprep.subr.bf16.mxu0 %v3365_v0  ;;  %v3352_v49 = vld [vmem:[%s4012_s9 + $0x8] sm:$0xff]   ;;  %v3353_v50 = vld [vmem:[%s4012_s9 + $0x10] sm:$0xff]  }
 0x1f0   :  { %3237 = vmatmul.mubr.msk.bf16.vlgmr.msra.gmra.mrb[72].mxu1 %vm1971_vm7, %v2265_v51  ;;  %v3354_v51 = vld [vmem:[%s4012_s9 + $0x18] sm:$0xff]  }
 0x1f1   :  { %3268 = vmatprep.mubr.msk.bf16.mxu1 %vm3366_vm1, %v3365_v0  ;;  %3261 = vmatpush3.bf16.msra.mxu1 %v3347_v28 }
 0x1f2   :  { %3249 = vmatpush3.bf16.msra.mxu0 %v3343_v16  ;;  %3262 = vmatprep.subr.bf16.mxu1 %v3365_v0 }
 0x1f3   :  { %3250 = vmatprep.subr.bf16.mxu0 %v3365_v0 }
 0x1f5   :  { %3263 = vmatpush3.bf16.msra.mxu1 %v3348_v29 }
 0x1f6   :  { %3251 = vmatpush3.bf16.msra.mxu0 %v3344_v63  ;;  %3264 = vmatprep.subr.bf16.mxu1 %v3365_v0 }
 0x1f7   :  { %3252 = vmatprep.subr.bf16.mxu0 %v3365_v0 }
 0x1f9   :  { %3265 = vmatpush3.bf16.msra.mxu1 %v3349_v38 }
 0x1fa   :  { %3253 = vmatpush3.bf16.msra.mxu0 %v3345_v18  ;;  %3266 = vmatprep.subr.bf16.mxu1 %v3365_v0 }
 0x1fb   :  { %3254 = vmatprep.subr.bf16.mxu0 %v3365_v0 }
 0x1fd   :  { %3267 = vmatpush3.bf16.msra.mxu1 %v3350_v39 }
 0x1fe   :  { %3255 = vmatpush3.bf16.msra.mxu0 %v3346_v19  ;;  %3272 = vmatprep.subr.bf16.mxu1 %v3365_v0 }
 0x284   :  { %v2008_v53 = vpop.f32.mrb[76].mxu0 }
 0x285   :  { %v2009_v54 = vadd.f32 %v2801_v52, %v2008_v53  ;;  %v3202_v55 = vpop.f32.mrb[77].mxu0  ;;  %v3356_v53 = vld [vmem:[%s4012_s9 + $0x28] sm:$0xff]  }
 0x286   :  { %v2011_v56 = vpop.f32.mrb[78].mxu0  ;;  %v3358_v55 = vld [vmem:[%s4012_s9 + $0x38] sm:$0xff]  }
 0x287   :  { %v2014_v57 = vmax.f32 %v2009_v54, 0.0  ;;  %v3203_v58 = vpop.f32.mrb[79].mxu0  ;;  %v3357_v54 = vld [vmem:[%s4012_s9 + $0x30] sm:$0xff]   ;;  %v2846_v56 = vld [vmem:[%s4014_s8] ss:$0 sm:$0xff] }
 0x289   :  { %v2015_v59 = vpack.c.bf16 %v2014_v57, %v2014_v57 }
 0x28b   :  { %2017 = vst.msk [vmem:[#allocation3] sm:$0xf] %vm2016_vm8, %v2015_v59 }
 0x292   :  { %v2351_v33 = vld [vmem:[#allocation3] sm:$0xf] }
 0x294   :  { %v2119_v60 = vpop.f32.mrb[68].mxu1 }
 0x295   :  { %v2120_v61 = vadd.f32 %v2801_v52, %v2119_v60  ;;  %v3214_v62 = vpop.f32.mrb[69].mxu1 }
 0x296   :  { %v2122_v1 = vpop.f32.mrb[70].mxu1 }
 0x297   :  { %v2125_v2 = vmax.f32 %v2120_v61, 0.0  ;;  %v3215_v3 = vpop.f32.mrb[71].mxu1 }
 0x298   :  { %v2852_v3 = vld [vmem:[%s4015_s10] ss:$0 sm:$0xff] }
 0x299   :  { %v2126_v5 = vpack.c.bf16 %v2125_v2, %v2125_v2  ;;  %v2687_v2 = vlaneseq }
 0x29b   :  { %2128 = vst.msk [vmem:[#allocation3 + $0x4] sm:$0xf] %vm2016_vm8, %v2126_v5 }
 0x2a2   :  { %v3336_v8 = vld [vmem:[#allocation3 + $0x4] ss:$0 sps:$4 sm:$0xff]  }
 0x2a3   :  { %2358 = vrot.lane.b32.xlu0 %v3336_v8, %s3368_s18 }
 0x2b4   :  { %v2230_v10 = vpop.f32.mrb[80].mxu0 }
 0x2b5   :  { %v2231_v11 = vadd.f32 %v2801_v52, %v2230_v10  ;;  %v3226_v12 = vpop.f32.mrb[81].mxu0 }
 0x2b6   :  { %v2233_v13 = vpop.f32.mrb[82].mxu0 }
 0x2b7   :  { %v2236_v14 = vmax.f32 %v2231_v11, 0.0  ;;  %v3227_v15 = vpop.f32.mrb[83].mxu0 }
 0x2b9   :  { %v2237_v17 = vpack.c.bf16 %v2236_v14, %v2236_v14 }
 0x2bb   :  { %2239 = vst.msk [vmem:[#allocation3 + $0x8] sm:$0xf] %vm2016_vm8, %v2237_v17 }
 0x2c2   :  { %v3337_v20 = vld [vmem:[#allocation3 + $0x8] ss:$0 sps:$4 sm:$0xff]  }
 0x2c3   :  { %v2341_v21 = vpop.f32.mrb[72].mxu1  ;;  %2363 = vrot.lane.b32.xlu1 %v3337_v20, %s3370_s16 }
 0x2c4   :  { %v2342_v22 = vadd.f32 %v2801_v52, %v2341_v21  ;;  %v3238_v23 = vpop.f32.mrb[73].mxu1  ;;  %v3355_v52 = vld [vmem:[%s4012_s9 + $0x20] sm:$0xff]  }
 0x2c5   :  { %v2344_v24 = vpop.f32.mrb[74].mxu1 }
 0x2c6   :  { %v2347_v25 = vmax.f32 %v2342_v22, 0.0  ;;  %v3239_v26 = vpop.f32.mrb[75].mxu1 }
 0x2c8   :  { %v2348_v27 = vpack.c.bf16 %v2347_v25, %v2347_v25 }
 0x2ca   :  { %2350 = vst.msk [vmem:[#allocation3 + $0xc] sm:$0xf] %vm2016_vm8, %v2348_v27 }
 0x2d1   :  { %v3338_v30 = vld [vmem:[#allocation3 + $0xc] ss:$0 sps:$4 sm:$0xff]  }
 0x2d2   :  { %2368 = vrot.lane.b32.xlu0 %v3338_v30, %s3371_s21 }
 0x315   :  { %v2359_v31 = vpop.permute.xlu0 %2358 }
 0x316   :  { %v2372_v34 = vsel %vm1926_vm5, %v2351_v33, %v2359_v31 }
 0x335   :  { %v2364_v32 = vpop.permute.xlu1 %2363 }
 0x336   :  { %v2374_v35 = vsel %vm1971_vm7, %v2372_v34, %v2364_v32 }
 0x344   :  { %v2369_v36 = vpop.permute.xlu0 %2368 }
 0x345   :  { %v2377_v37 = vsel %vm2375_vm9, %v2374_v35, %v2369_v36 }
 0x346   :  { %3257 = vmatmul.mubr.bf16.vlgmr.msra.gmra.mrb[84].mxu0 %v2377_v37 }
 0x419   :  { %v2484_v41 = vpop.f32.mrb[84].mxu0 }
 0x41a   :  { %v2485_v42 = vadd.f32 %v2837_v40, %v2484_v41  ;;  %v3258_v43 = vpop.f32.mrb[85].mxu0 }
 0x41b   :  { %v2487_v44 = vpop.f32.mrb[86].mxu0 }
 0x41c   :  { %v2490_v45 = vmax.f32 %v2485_v42, 0.0  ;;  %v3259_v46 = vpop.f32.mrb[87].mxu0 }
 0x41e   :  { %v2491_v48 = vpack.c.bf16 %v2490_v45, %v2490_v45 }
 0x420   :  { %3269 = vmatmul.mubr.msk.bf16.vlgmr.msra.gmra.mrb[76].mxu1 %vm1971_vm7, %v2491_v48 }
 0x421   :  { %3273 = vmatpush3.bf16.msra.mxu1 %v3351_v47  ;;  %3288 = vmatprep.mubr.msk.bf16.mxu1 %vm3366_vm1, %v3365_v0 }
 0x422   :  { %3274 = vmatprep.subr.bf16.mxu1 %v3365_v0 }
 0x425   :  { %3275 = vmatpush3.bf16.msra.mxu1 %v3352_v49 }
 0x426   :  { %3276 = vmatprep.subr.bf16.mxu1 %v3365_v0 }
 0x429   :  { %3277 = vmatpush3.bf16.msra.mxu1 %v3353_v50 }
 0x42a   :  { %3278 = vmatprep.subr.bf16.mxu1 %v3365_v0 }
 0x42d   :  { %3279 = vmatpush3.bf16.msra.mxu1 %v3354_v51 }
 0x42e   :  { %3280 = vmatprep.subr.bf16.mxu1 %v3365_v0 }
 0x431   :  { %3281 = vmatpush3.bf16.msra.mxu1 %v3355_v52 }
 0x432   :  { %3282 = vmatprep.subr.bf16.mxu1 %v3365_v0 }
 0x435   :  { %3283 = vmatpush3.bf16.msra.mxu1 %v3356_v53 }
 0x436   :  { %3284 = vmatprep.subr.bf16.mxu1 %v3365_v0 }
 0x439   :  { %3285 = vmatpush3.bf16.msra.mxu1 %v3357_v54 }
 0x43a   :  { %3286 = vmatprep.subr.bf16.mxu1 %v3365_v0  ;;  %v2688_v0 = vand.u32 127, %v2687_v2 }
 0x43c   :  { %vm2701_vm10 = vcmp.eq.s32.totalorder %v2688_v0, 7  ;;  %vm2689_vm11 = vcmp.lt.s32.totalorder %v2688_v0, 7 }
 0x43d   :  { %3287 = vmatpush3.bf16.msra.mxu1 %v3358_v55 }
 0x4f3   :  { %v2568_v57 = vpop.f32.mrb[76].mxu1 }
 0x4f4   :  { %v2569_v58 = vadd.f32 %v2846_v56, %v2568_v57  ;;  %v3270_v59 = vpop.f32.mrb[77].mxu1 }
 0x4f5   :  { %v2571_v60 = vpop.f32.mrb[78].mxu1 }
 0x4f6   :  { %3359 = vtanh.f32 %v2569_v58  ;;  %v3271_v61 = vpop.f32.mrb[79].mxu1 }
 0x500   :  { %v3360_v62 = vpop.eup %3359 }
 0x501   :  { %v2575_v1 = vpack.c.bf16 %v3360_v62, %v3360_v62 }
 0x503   :  { %3289 = vmatmul.mubr.bf16.vlgmr.msra.gmra.mrb[80].mxu1 %v2575_v1 }
 0x5d6   :  { %v2681_v4 = vpop.f32.mrb[80].mxu1 }
 0x5d7   :  { %v2682_v5 = vadd.f32 %v2852_v3, %v2681_v4  ;;  %v3290_v6 = vpop.f32.mrb[81].mxu1 }
 0x5d8   :  { %v2684_v7 = vpop.f32.mrb[82].mxu1 }
 0x5d9   :  { %v2702_v8 = vsel %vm2701_vm10, %v2682_v5, 0.0  ;;  %v3291_v9 = vpop.f32.mrb[83].mxu1  ;;  %v2690_v10 = vsel %vm2689_vm11, %v2682_v5, -1e+30 }
 0x5da   :  { %2691 = vmax.xlane.f32.xlu1 %v2690_v10 }
 0x667   :  { %v2692_v11 = vpop.xlane.xlu1 %2691 }
 0x668   :  { %v2693_v12 = vsub.f32 %v2690_v10, %v2692_v11 }
 0x66a   :  { %v2694_v13 = vmul.f32 1.442695, %v2693_v12 }
 0x66c   :  { %3361 = vpow2.f32 %v2694_v13 }
 0x676   :  { %v3362_v14 = vpop.eup %3361 }
 0x677   :  { %2696 = vadd.xlane.f32.xlu0 %v3362_v14 }
 0x704   :  { %v2697_v15 = vpop.xlane.xlu0 %2696 }
 0x705   :  { %3363 = vlog2.f32 %v2697_v15 }
 0x70f   :  { %v3364_v16 = vpop.eup %3363 }
 0x710   :  { %v2699_v17 = vmul.f32 0.6931472, %v3364_v16 }
 0x712   :  { %v2700_v63 = vsub.f32 %v2693_v12, %v2699_v17 }
 0x714   :  { %v2703_v18 = vsel %vm2689_vm11, %v2700_v63, %v2702_v8 }
 0x715   :  { %2704 = vst [vmem:[%s4016_s11] sm:$0xff] %v2703_v18 }

</bundles_post_ra>
